<compile_context>
chip_gen: v7x
topology: tpu7x:2x2x1
jax: 0.10.0
libtpu: 0.0.40
codegen_flags: <defaults>
</compile_context>

<pallas_src>
import math

import jax
import jax.numpy as jnp
from jax.experimental import pallas as pl
from jax.experimental.pallas import tpu as pltpu


def _silu(x):
    return x * jax.nn.sigmoid(x)


# --------------------------------------------------------------------------------------
# Kernel: all three MambaBlocks; batch folded into matmul rows (B*L, D) and, for the
# conv, into the lane dimension (L, B*2D).
# --------------------------------------------------------------------------------------
def mamba3_kernel(
    x_ref,        # (B*L, D)   activations, batch-major rows (row = b*L + l)
    in_d_w_ref,   # (n_layers, D, 4D)      norm-folded [inp_proj.T | D.T]
    in_d_b_ref,   # (n_layers, 1, 4D)
    conv_w_ref,   # (n_layers, 3L, L)      conv taps k=0,1,2 stacked on rows
    conv_b_ref,   # (n_layers, L, 1)
    s6_w_ref,     # (n_layers, 2D, 2N+4D)  fused conv_linear+S6: [B | C | x_conv_out | delta]
    s6_b_ref,     # (n_layers, 1, 2N+4D)
    out_w_ref,    # (n_layers, 2D, D)
    out_b_ref,    # (n_layers, 1, D)
    o_ref,        # (B*L, D)
):
    f32 = jnp.float32
    BL, D = x_ref.shape
    D2 = 2 * D
    n_layers, _, L = conv_w_ref.shape
    B = BL // L
    BD2 = B * D2
    N = (s6_w_ref.shape[2] - 2 * D2) // 2

    # Lane masks for the conv's +/-1 shifts along d within each per-batch lane block.
    # Hoisted: shared by all layers (broadcasts are not CSE'd by JAX).
    d_in_blk = jax.lax.broadcasted_iota(jnp.int32, (L, BD2), 1) % D2
    first_col = d_in_blk == 0           # d == 0     -> zero after right-shift
    last_col = d_in_blk == D2 - 1       # d == 2D-1  -> zero after left-shift

    x = x_ref[...].astype(f32)                                        # (BL, D)

    for layer in range(n_layers):                                     # static unroll (3)
        # ---- RMSNorm (weight folded into in_d_w at pack time) ----
        ms = jnp.mean(x * x, axis=-1, keepdims=True)
        xn = x * jax.lax.rsqrt(ms + 1e-5)                             # (BL, D)

        # ---- fused inp_proj + D (residual) projection ----
        z = (jnp.dot(xn, in_d_w_ref[layer], preferred_element_type=f32)
             + in_d_b_ref[layer])                                     # (BL, 4D)
        x_proj = z[:, :D2]                                            # (BL, 2D)
        x_res = _silu(z[:, D2:])                                      # (BL, 2D)

        # ---- Conv1d(channels=L, k=3, pad=1): batch folded into lanes ----
        # Per-batch row blocks of x_proj stacked along lanes -> ONE matmul.
        xp = jnp.concatenate(
            [x_proj[b * L:(b + 1) * L, :] for b in range(B)], axis=1)  # (L, B*2D)
        y = jnp.dot(conv_w_ref[layer], xp, preferred_element_type=f32)  # (3L, B*2D)
        y0 = y[0 * L:1 * L]                                           # tap k=0 (reads d-1)
        y1 = y[1 * L:2 * L]                                           # tap k=1 (reads d)
        y2 = y[2 * L:3 * L]                                           # tap k=2 (reads d+1)
        # +/-1 lane shifts via the XLU; batch-block boundary lanes carry the
        # wrapped/padding positions and are zeroed.
        y0s = jnp.where(first_col, 0.0, pltpu.roll(y0, shift=1, axis=1))
        y2s = jnp.where(last_col, 0.0, pltpu.roll(y2, shift=BD2 - 1, axis=1))
        wide = y0s + y1 + y2s + conv_b_ref[layer]                     # (L, B*2D)
        x_conv = jnp.concatenate(
            [wide[:, b * D2:(b + 1) * D2] for b in range(B)], axis=0)  # (BL, 2D)
        x_conv_act = _silu(x_conv)

        # ---- fused conv_linear + S6 projections: [B | C | x_conv_out | delta] ----
        s = (jnp.dot(x_conv_act, s6_w_ref[layer], preferred_element_type=f32)
             + s6_b_ref[layer])                                       # (BL, 2N+4D)
        Bm = s[:, :N]                                                 # (BL, N)
        Cm = s[:, N:2 * N]                                            # (BL, N)
        x_conv_out = s[:, 2 * N:2 * N + D2]                           # (BL, 2D)
        delta = jax.nn.softplus(s[:, 2 * N + D2:])                    # (BL, 2D)
        # h starts at zero and there is no recurrence in the reference forward,
        # so A/dA drop out exactly: y = x_conv_out * delta * sum_n(C * B).
        cb = jnp.sum(Cm * Bm, axis=-1, keepdims=True)                 # (BL, 1)
        x_ssm = x_conv_out * delta * cb                               # (BL, 2D)

        # ---- gate + out_proj ----
        x_comb = _silu(x_ssm) * x_res
        x = (jnp.dot(x_comb, out_w_ref[layer], preferred_element_type=f32)
             + out_b_ref[layer])                                      # (BL, D)

    o_ref[...] = x.astype(o_ref.dtype)


# --------------------------------------------------------------------------------------
# One-time weight packing (outside the jitted forward): transpose, fuse, stack layers.
# --------------------------------------------------------------------------------------
PACK_KEYS = ("in_d_w", "in_d_b", "conv_w", "conv_b", "s6_w", "s6_b", "out_w", "out_b")


def pack_params(params_list):
    def per_layer(p):
        clinT = p["clin_w"].T                                              # (2D, 2D)
        # RMSNorm weight folded into the fused [inp_proj | D] projection.
        in_d_w = p["norm_w"][:, None] * jnp.concatenate(
            [p["inp_w"].T, p["d_w"].T], axis=1)                            # (D, 4D)
        # conv_linear folded into the S6 projections: [B | C | x_conv_out | delta].
        s6_w = jnp.concatenate(
            [clinT @ p["fc2_w"].T, clinT @ p["fc3_w"].T, clinT, clinT @ p["fc1_w"].T],
            axis=1)                                                        # (2D, 2N+4D)
        s6_b = jnp.concatenate(
            [p["clin_b"] @ p["fc2_w"].T + p["fc2_b"],
             p["clin_b"] @ p["fc3_w"].T + p["fc3_b"],
             p["clin_b"],
             p["clin_b"] @ p["fc1_w"].T + p["fc1_b"]])                     # (2N+4D,)
        return dict(
            in_d_w=in_d_w,
            in_d_b=jnp.concatenate([p["inp_b"], p["d_b"]])[None, :],       # (1, 4D)
            conv_w=jnp.concatenate([p["conv_w"][:, :, k] for k in range(3)],
                                   axis=0),                                # (3L, L)
            conv_b=p["conv_b"][:, None],                                   # (L, 1)
            s6_w=s6_w,
            s6_b=s6_b[None, :],                                            # (1, 2N+4D)
            out_w=p["out_w"].T,                                            # (2D, D)
            out_b=p["out_b"][None, :],                                     # (1, D)
        )
    layers = [per_layer(p) for p in params_list]
    return {k: jnp.stack([lyr[k] for lyr in layers], axis=0) for k in PACK_KEYS}


def _cost_estimate(B, L, D, N, n_layers):
    BL = B * L
    D2 = 2 * D
    per_layer_flops = (2 * BL * D * (4 * D)              # fused inp_proj + D
                       + 2 * (3 * L) * L * (B * D2)      # conv (3 taps, per-batch weight)
                       + 2 * BL * D2 * (2 * N + 2 * D2)  # fused conv_linear + S6
                       + 2 * BL * D2 * D)                # out_proj
    flops = n_layers * per_layer_flops
    transcendentals = n_layers * BL * (6 * D2 + 1)       # silu sigmoids + softplus + rsqrt (rough)
    return int(flops), int(transcendentals)


def mamba_forward_pallas(x, packed):
    B, L, D = x.shape
    BL = B * L
    D2 = 2 * D
    N = (packed["s6_w"].shape[-1] - 2 * D2) // 2
    n_layers = packed["conv_w"].shape[0]

    x2 = x.reshape(BL, D)                        # fold batch into the matmul M dimension
    args = (x2,) + tuple(packed[k] for k in PACK_KEYS)

    flops, transc = _cost_estimate(B, L, D, N, n_layers)
    bytes_accessed = int(sum(a.size * a.dtype.itemsize for a in args)
                         + BL * D * x.dtype.itemsize)

    out2 = pl.pallas_call(
        mamba3_kernel,
        out_shape=jax.ShapeDtypeStruct((BL, D), x.dtype),
        # No grid: single invocation, everything resident in VMEM once.
        in_specs=[pl.BlockSpec(memory_space=pltpu.MemorySpace.VMEM)] * len(args),
        out_specs=pl.BlockSpec(memory_space=pltpu.MemorySpace.VMEM),
        compiler_params=pltpu.CompilerParams(
            vmem_limit_bytes=32 * 1024 * 1024),  # generous; actual footprint << 1 MiB
        cost_estimate=pl.CostEstimate(flops=flops, transcendentals=transc,
                                      bytes_accessed=bytes_accessed),
    )(*args)
    return out2.reshape(B, L, D)


@jax.jit
def mamba_forward(x, packed):
    return mamba_forward_pallas(x, packed)


# --------------------------------------------------------------------------------------
# Deterministic parameter init (mirrors the nn.Module shapes / init).
# --------------------------------------------------------------------------------------
def _init_linear(key, fan_in, fan_out):
    kw, kb = jax.random.split(key)
    bound = 1.0 / math.sqrt(fan_in)
    w = jax.random.uniform(kw, (fan_out, fan_in), jnp.float32, -bound, bound)
    b = jax.random.uniform(kb, (fan_out,), jnp.float32, -bound, bound)
    return w, b


def init_block_params(key, seq_len, d_model, state_size):
    D, D2, N, L = d_model, 2 * d_model, state_size, seq_len
    keys = jax.random.split(key, 10)
    inp_w, inp_b = _init_linear(keys[0], D, D2)
    out_w, _ = _init_linear(keys[1], D2, D)
    out_b = jnp.ones((D,), jnp.float32)               # nn.init.constant_(out_proj.bias, 1.0)
    d_w, d_b = _init_linear(keys[2], D, D2)
    fc1_w, fc1_b = _init_linear(keys[3], D2, D2)
    fc2_w, fc2_b = _init_linear(keys[4], D2, N)
    fc3_w, fc3_b = _init_linear(keys[5], D2, N)
    a_bound = math.sqrt(6.0 / (D2 + N))               # xavier_uniform_ (A drops out of fwd)
    A = jax.random.uniform(keys[6], (D2, N), jnp.float32, -a_bound, a_bound)
    conv_bound = 1.0 / math.sqrt(L * 3)
    conv_w = jax.random.uniform(keys[7], (L, L, 3), jnp.float32, -conv_bound, conv_bound)
    conv_b = jax.random.uniform(keys[8], (L,), jnp.float32, -conv_bound, conv_bound)
    clin_w, clin_b = _init_linear(keys[9], D2, D2)
    norm_w = jnp.ones((D,), jnp.float32)
    return dict(norm_w=norm_w, inp_w=inp_w, inp_b=inp_b, conv_w=conv_w, conv_b=conv_b,
                clin_w=clin_w, clin_b=clin_b, fc1_w=fc1_w, fc1_b=fc1_b, fc2_w=fc2_w,
                fc2_b=fc2_b, fc3_w=fc3_w, fc3_b=fc3_b, A=A, d_w=d_w, d_b=d_b,
                out_w=out_w, out_b=out_b)


# --------------------------------------------------------------------------------------
# Plain-JAX reference (follows the PyTorch math literally).
# --------------------------------------------------------------------------------------
def mamba_block_ref(x, p):
    xn = x * jax.lax.rsqrt(jnp.mean(x * x, -1, keepdims=True) + 1e-5) * p["norm_w"]
    x_proj = xn @ p["inp_w"].T + p["inp_b"]
    x_conv = jax.lax.conv_general_dilated(
        x_proj, p["conv_w"], window_strides=(1,), padding=((1, 1),),
        dimension_numbers=("NCH", "OIH", "NCH")) + p["conv_b"][None, :, None]
    x_conv_act = jax.nn.silu(x_conv)
    x_conv_out = x_conv_act @ p["clin_w"].T + p["clin_b"]
    Bm = x_conv_out @ p["fc2_w"].T + p["fc2_b"]
    Cm = x_conv_out @ p["fc3_w"].T + p["fc3_b"]
    delta = jax.nn.softplus(x_conv_out @ p["fc1_w"].T + p["fc1_b"])
    dB = jnp.einsum("bld,bln->bldn", delta, Bm)
    dA = jnp.exp(jnp.einsum("bld,dn->bldn", delta, p["A"]))
    h = dA * 0.0 + x_conv_out[..., None] * dB          # h_0 == 0, no recurrence
    y = jnp.einsum("bln,bldn->bld", Cm, h)
    x_act = jax.nn.silu(y)
    x_res = jax.nn.silu(xn @ p["d_w"].T + p["d_b"])
    return (x_act * x_res) @ p["out_w"].T + p["out_b"]


if __name__ == "__main__":
    # Small shapes consistent with the module (d_model=8, state_size=128 as in the spec;
    # short seq_len / batch to keep the example tiny).
    batch, seq_len, d_model, state_size = 2, 8, 8, 128

    key = jax.random.PRNGKey(0)
    kx, k1, k2, k3 = jax.random.split(key, 4)
    x = jax.random.normal(kx, (batch, seq_len, d_model), jnp.float32)
    params = [init_block_params(k, seq_len, d_model, state_size) for k in (k1, k2, k3)]

    packed = pack_params(params)                      # one-time weight packing / fusion

    out = mamba_forward(x, packed)
    out = jax.block_until_ready(out)

    ref = x
    for p in params:
        ref = mamba_block_ref(ref, p)

    assert out.shape == (batch, seq_len, d_model)
    err = float(jnp.max(jnp.abs(out - ref)))
    assert jnp.allclose(out, ref, atol=1e-3, rtol=1e-4), err
    print("KERNEL_OK")
</pallas_src>

<mosaic_0001>
module attributes {stable_mosaic.version = 11 : i64} {
  func.func @mamba3_kernel(%arg0: memref<16x8xf32, #tpu.memory_space<vmem>>, %arg1: memref<3x8x32xf32, #tpu.memory_space<vmem>>, %arg2: memref<3x1x32xf32, #tpu.memory_space<vmem>>, %arg3: memref<3x24x8xf32, #tpu.memory_space<vmem>>, %arg4: memref<3x8x1xf32, #tpu.memory_space<vmem>>, %arg5: memref<3x16x288xf32, #tpu.memory_space<vmem>>, %arg6: memref<3x1x288xf32, #tpu.memory_space<vmem>>, %arg7: memref<3x16x8xf32, #tpu.memory_space<vmem>>, %arg8: memref<3x1x8xf32, #tpu.memory_space<vmem>>, %arg9: memref<16x8xf32, #tpu.memory_space<vmem>>) attributes {dimension_semantics = [], scalar_prefetch = 0 : i64, scratch_operands = 0 : i64, tpu.core_type = #tpu.core_type<tc>} {
    %0 = tpu.iota {dimensions = array<i32: 1>} : vector<8x32xi32>
    %c16_i32 = arith.constant 16 : i32
    %c0_i32 = arith.constant 0 : i32
    %1 = arith.cmpi eq, %c16_i32, %c0_i32 : i32
    %c1_i32 = arith.constant 1 : i32
    %2 = arith.select %1, %c1_i32, %c16_i32 : i32
    %3 = vector.broadcast %2 : i32 to vector<8x32xi32>
    %4 = arith.remsi %0, %3 : vector<8x32xi32>
    %c0_i32_0 = arith.constant 0 : i32
    %5 = vector.broadcast %c0_i32_0 : i32 to vector<8x32xi32>
    %6 = arith.cmpi ne, %4, %5 : vector<8x32xi32>
    %c0_i32_1 = arith.constant 0 : i32
    %7 = vector.broadcast %c0_i32_1 : i32 to vector<8x32xi32>
    %8 = arith.cmpi slt, %4, %7 : vector<8x32xi32>
    %c0_i32_2 = arith.constant 0 : i32
    %9 = arith.cmpi slt, %2, %c0_i32_2 : i32
    %10 = vector.broadcast %9 : i1 to vector<8x32xi1>
    %11 = vector.broadcast %10 : vector<8x32xi1> to vector<8x32xi1>
    %12 = arith.xori %8, %11 : vector<8x32xi1>
    %13 = arith.andi %12, %6 : vector<8x32xi1>
    %14 = vector.broadcast %2 : i32 to vector<8x32xi32>
    %15 = arith.addi %4, %14 : vector<8x32xi32>
    %16 = arith.select %13, %15, %4 : vector<8x32xi1>, vector<8x32xi32>
    %c0_i32_3 = arith.constant 0 : i32
    %17 = vector.broadcast %c0_i32_3 : i32 to vector<8x32xi32>
    %18 = arith.cmpi eq, %16, %17 : vector<8x32xi32>
    %c15_i32 = arith.constant 15 : i32
    %19 = vector.broadcast %c15_i32 : i32 to vector<8x32xi32>
    %20 = arith.cmpi eq, %16, %19 : vector<8x32xi32>
    %c0 = arith.constant 0 : index
    %c0_4 = arith.constant 0 : index
    %21 = vector.load %arg0[%c0, %c0_4] : memref<16x8xf32, #tpu.memory_space<vmem>>, vector<16x8xf32>
    %22 = arith.mulf %21, %21 : vector<16x8xf32>
    %cst = arith.constant dense<0.000000e+00> : vector<16xf32>
    %23 = vector.multi_reduction <add>, %22, %cst [1] : vector<16x8xf32> to vector<16xf32>
    %24 = vector.shape_cast %23 : vector<16xf32> to vector<16x1xf32>
    %cst_5 = arith.constant 8.000000e+00 : f32
    %25 = vector.broadcast %cst_5 : f32 to vector<16x1xf32>
    %26 = arith.divf %24, %25 : vector<16x1xf32>
    %cst_6 = arith.constant 9.99999974E-6 : f32
    %27 = vector.broadcast %cst_6 : f32 to vector<16x1xf32>
    %28 = arith.addf %26, %27 : vector<16x1xf32>
    %29 = math.rsqrt %28 : vector<16x1xf32>
    %30 = vector.broadcast %29 : vector<16x1xf32> to vector<16x8xf32>
    %31 = arith.mulf %21, %30 : vector<16x8xf32>
    %c0_7 = arith.constant 0 : index
    %c0_8 = arith.constant 0 : index
    %c0_9 = arith.constant 0 : index
    %32 = vector.load %arg1[%c0_7, %c0_8, %c0_9] : memref<3x8x32xf32, #tpu.memory_space<vmem>>, vector<1x8x32xf32>
    %33 = vector.shape_cast %32 : vector<1x8x32xf32> to vector<8x32xf32>
    %cst_10 = arith.constant dense<0.000000e+00> : vector<16x32xf32>
    %34 = tpu.matmul %31, %33, %cst_10 {dimension_numbers = #tpu.dot_dimension_numbers<[1], [0], [0], [1], [0, 0, 1, 1], [], []>} : vector<16x8xf32>, vector<8x32xf32>, vector<16x32xf32> -> vector<16x32xf32>
    %c0_11 = arith.constant 0 : index
    %c0_12 = arith.constant 0 : index
    %c0_13 = arith.constant 0 : index
    %35 = vector.load %arg2[%c0_11, %c0_12, %c0_13] : memref<3x1x32xf32, #tpu.memory_space<vmem>>, vector<1x1x32xf32>
    %36 = vector.shape_cast %35 : vector<1x1x32xf32> to vector<1x32xf32>
    %37 = vector.broadcast %36 : vector<1x32xf32> to vector<16x32xf32>
    %38 = arith.addf %34, %37 : vector<16x32xf32>
    %39 = vector.extract_strided_slice %38 {offsets = [0, 0], sizes = [16, 16], strides = [1, 1]} : vector<16x32xf32> to vector<16x16xf32>
    %40 = vector.extract_strided_slice %38 {offsets = [0, 16], sizes = [16, 16], strides = [1, 1]} : vector<16x32xf32> to vector<16x16xf32>
    %41 = arith.negf %40 : vector<16x16xf32>
    %42 = math.exp %41 : vector<16x16xf32>
    %cst_14 = arith.constant 1.000000e+00 : f32
    %43 = vector.broadcast %cst_14 : f32 to vector<16x16xf32>
    %44 = arith.addf %43, %42 : vector<16x16xf32>
    %45 = arith.divf %43, %44 : vector<16x16xf32>
    %46 = arith.mulf %40, %45 : vector<16x16xf32>
    %47 = vector.extract_strided_slice %39 {offsets = [0, 0], sizes = [8, 16], strides = [1, 1]} : vector<16x16xf32> to vector<8x16xf32>
    %48 = vector.extract_strided_slice %39 {offsets = [8, 0], sizes = [8, 16], strides = [1, 1]} : vector<16x16xf32> to vector<8x16xf32>
    %49 = tpu.concatenate %47, %48 in 1 : vector<8x16xf32>, vector<8x16xf32> -> vector<8x32xf32>
    %c0_15 = arith.constant 0 : index
    %c0_16 = arith.constant 0 : index
    %c0_17 = arith.constant 0 : index
    %50 = vector.load %arg3[%c0_15, %c0_16, %c0_17] : memref<3x24x8xf32, #tpu.memory_space<vmem>>, vector<1x24x8xf32>
    %51 = vector.shape_cast %50 : vector<1x24x8xf32> to vector<24x8xf32>
    %cst_18 = arith.constant dense<0.000000e+00> : vector<24x32xf32>
    %52 = tpu.matmul %51, %49, %cst_18 {dimension_numbers = #tpu.dot_dimension_numbers<[1], [0], [0], [1], [0, 0, 1, 1], [], []>} : vector<24x8xf32>, vector<8x32xf32>, vector<24x32xf32> -> vector<24x32xf32>
    %53 = vector.extract_strided_slice %52 {offsets = [0, 0], sizes = [8, 32], strides = [1, 1]} : vector<24x32xf32> to vector<8x32xf32>
    %54 = vector.extract_strided_slice %52 {offsets = [8, 0], sizes = [8, 32], strides = [1, 1]} : vector<24x32xf32> to vector<8x32xf32>
    %55 = vector.extract_strided_slice %52 {offsets = [16, 0], sizes = [8, 32], strides = [1, 1]} : vector<24x32xf32> to vector<8x32xf32>
    %c1_i32_19 = arith.constant 1 : i32
    %56 = tpu.dynamic_rotate %53 by %c1_i32_19 dim 1 : vector<8x32xf32>, i32 -> vector<8x32xf32>
    %cst_20 = arith.constant 0.000000e+00 : f32
    %57 = vector.broadcast %cst_20 : f32 to vector<8x32xf32>
    %58 = arith.select %18, %57, %56 : vector<8x32xi1>, vector<8x32xf32>
    %c31_i32 = arith.constant 31 : i32
    %59 = tpu.dynamic_rotate %55 by %c31_i32 dim 1 : vector<8x32xf32>, i32 -> vector<8x32xf32>
    %cst_21 = arith.constant 0.000000e+00 : f32
    %60 = vector.broadcast %cst_21 : f32 to vector<8x32xf32>
    %61 = arith.select %20, %60, %59 : vector<8x32xi1>, vector<8x32xf32>
    %62 = arith.addf %58, %54 : vector<8x32xf32>
    %63 = arith.addf %62, %61 : vector<8x32xf32>
    %c0_22 = arith.constant 0 : index
    %c0_23 = arith.constant 0 : index
    %c0_24 = arith.constant 0 : index
    %64 = vector.load %arg4[%c0_22, %c0_23, %c0_24] : memref<3x8x1xf32, #tpu.memory_space<vmem>>, vector<1x8x1xf32>
    %65 = vector.shape_cast %64 : vector<1x8x1xf32> to vector<8x1xf32>
    %66 = vector.broadcast %65 : vector<8x1xf32> to vector<8x32xf32>
    %67 = arith.addf %63, %66 : vector<8x32xf32>
    %68 = vector.extract_strided_slice %67 {offsets = [0, 0], sizes = [8, 16], strides = [1, 1]} : vector<8x32xf32> to vector<8x16xf32>
    %69 = vector.extract_strided_slice %67 {offsets = [0, 16], sizes = [8, 16], strides = [1, 1]} : vector<8x32xf32> to vector<8x16xf32>
    %70 = tpu.concatenate %68, %69 in 0 : vector<8x16xf32>, vector<8x16xf32> -> vector<16x16xf32>
    %71 = arith.negf %70 : vector<16x16xf32>
    %72 = math.exp %71 : vector<16x16xf32>
    %cst_25 = arith.constant 1.000000e+00 : f32
    %73 = vector.broadcast %cst_25 : f32 to vector<16x16xf32>
    %74 = arith.addf %73, %72 : vector<16x16xf32>
    %75 = arith.divf %73, %74 : vector<16x16xf32>
    %76 = arith.mulf %70, %75 : vector<16x16xf32>
    %c0_26 = arith.constant 0 : index
    %c0_27 = arith.constant 0 : index
    %c0_28 = arith.constant 0 : index
    %77 = vector.load %arg5[%c0_26, %c0_27, %c0_28] : memref<3x16x288xf32, #tpu.memory_space<vmem>>, vector<1x16x288xf32>
    %78 = vector.shape_cast %77 : vector<1x16x288xf32> to vector<16x288xf32>
    %cst_29 = arith.constant dense<0.000000e+00> : vector<16x288xf32>
    %79 = tpu.matmul %76, %78, %cst_29 {dimension_numbers = #tpu.dot_dimension_numbers<[1], [0], [0], [1], [0, 0, 1, 1], [], []>} : vector<16x16xf32>, vector<16x288xf32>, vector<16x288xf32> -> vector<16x288xf32>
    %c0_30 = arith.constant 0 : index
    %c0_31 = arith.constant 0 : index
    %c0_32 = arith.constant 0 : index
    %80 = vector.load %arg6[%c0_30, %c0_31, %c0_32] : memref<3x1x288xf32, #tpu.memory_space<vmem>>, vector<1x1x288xf32>
    %81 = vector.shape_cast %80 : vector<1x1x288xf32> to vector<1x288xf32>
    %82 = vector.broadcast %81 : vector<1x288xf32> to vector<16x288xf32>
    %83 = arith.addf %79, %82 : vector<16x288xf32>
    %84 = vector.extract_strided_slice %83 {offsets = [0, 0], sizes = [16, 128], strides = [1, 1]} : vector<16x288xf32> to vector<16x128xf32>
    %85 = vector.extract_strided_slice %83 {offsets = [0, 128], sizes = [16, 128], strides = [1, 1]} : vector<16x288xf32> to vector<16x128xf32>
    %86 = vector.extract_strided_slice %83 {offsets = [0, 256], sizes = [16, 16], strides = [1, 1]} : vector<16x288xf32> to vector<16x16xf32>
    %87 = vector.extract_strided_slice %83 {offsets = [0, 272], sizes = [16, 16], strides = [1, 1]} : vector<16x288xf32> to vector<16x16xf32>
    %cst_33 = arith.constant 0.000000e+00 : f32
    %88 = vector.broadcast %cst_33 : f32 to vector<16x16xf32>
    %89 = arith.maximumf %87, %88 : vector<16x16xf32>
    %90 = vector.broadcast %cst_33 : f32 to vector<16x16xf32>
    %91 = arith.subf %87, %90 : vector<16x16xf32>
    %92 = arith.cmpf one, %91, %91 : vector<16x16xf32>
    %93 = vector.broadcast %cst_33 : f32 to vector<16x16xf32>
    %94 = arith.addf %87, %93 : vector<16x16xf32>
    %95 = math.absf %91 : vector<16x16xf32>
    %cst_34 = arith.constant 0.000000e+00 : f32
    %96 = vector.broadcast %cst_34 : f32 to vector<16x16xf32>
    %97 = arith.subf %96, %95 : vector<16x16xf32>
    %98 = math.exp %97 : vector<16x16xf32>
    %99 = math.log1p %98 : vector<16x16xf32>
    %100 = arith.addf %89, %99 : vector<16x16xf32>
    %101 = arith.select %92, %94, %100 : vector<16x16xi1>, vector<16x16xf32>
    %102 = arith.mulf %85, %84 : vector<16x128xf32>
    %cst_35 = arith.constant dense<0.000000e+00> : vector<16xf32>
    %103 = vector.multi_reduction <add>, %102, %cst_35 [1] : vector<16x128xf32> to vector<16xf32>
    %104 = vector.shape_cast %103 : vector<16xf32> to vector<16x1xf32>
    %105 = arith.mulf %86, %101 : vector<16x16xf32>
    %106 = vector.broadcast %104 : vector<16x1xf32> to vector<16x16xf32>
    %107 = arith.mulf %105, %106 : vector<16x16xf32>
    %108 = arith.negf %107 : vector<16x16xf32>
    %109 = math.exp %108 : vector<16x16xf32>
    %cst_36 = arith.constant 1.000000e+00 : f32
    %110 = vector.broadcast %cst_36 : f32 to vector<16x16xf32>
    %111 = arith.addf %110, %109 : vector<16x16xf32>
    %112 = arith.divf %110, %111 : vector<16x16xf32>
    %113 = arith.mulf %107, %112 : vector<16x16xf32>
    %114 = arith.mulf %113, %46 : vector<16x16xf32>
    %c0_37 = arith.constant 0 : index
    %c0_38 = arith.constant 0 : index
    %c0_39 = arith.constant 0 : index
    %115 = vector.load %arg7[%c0_37, %c0_38, %c0_39] : memref<3x16x8xf32, #tpu.memory_space<vmem>>, vector<1x16x8xf32>
    %116 = vector.shape_cast %115 : vector<1x16x8xf32> to vector<16x8xf32>
    %cst_40 = arith.constant dense<0.000000e+00> : vector<16x8xf32>
    %117 = tpu.matmul %114, %116, %cst_40 {dimension_numbers = #tpu.dot_dimension_numbers<[1], [0], [0], [1], [0, 0, 1, 1], [], []>} : vector<16x16xf32>, vector<16x8xf32>, vector<16x8xf32> -> vector<16x8xf32>
    %c0_41 = arith.constant 0 : index
    %c0_42 = arith.constant 0 : index
    %c0_43 = arith.constant 0 : index
    %118 = vector.load %arg8[%c0_41, %c0_42, %c0_43] : memref<3x1x8xf32, #tpu.memory_space<vmem>>, vector<1x1x8xf32>
    %119 = vector.shape_cast %118 : vector<1x1x8xf32> to vector<1x8xf32>
    %120 = vector.broadcast %119 : vector<1x8xf32> to vector<16x8xf32>
    %121 = arith.addf %117, %120 : vector<16x8xf32>
    %122 = arith.mulf %121, %121 : vector<16x8xf32>
    %cst_44 = arith.constant dense<0.000000e+00> : vector<16xf32>
    %123 = vector.multi_reduction <add>, %122, %cst_44 [1] : vector<16x8xf32> to vector<16xf32>
    %124 = vector.shape_cast %123 : vector<16xf32> to vector<16x1xf32>
    %cst_45 = arith.constant 8.000000e+00 : f32
    %125 = vector.broadcast %cst_45 : f32 to vector<16x1xf32>
    %126 = arith.divf %124, %125 : vector<16x1xf32>
    %cst_46 = arith.constant 9.99999974E-6 : f32
    %127 = vector.broadcast %cst_46 : f32 to vector<16x1xf32>
    %128 = arith.addf %126, %127 : vector<16x1xf32>
    %129 = math.rsqrt %128 : vector<16x1xf32>
    %130 = vector.broadcast %129 : vector<16x1xf32> to vector<16x8xf32>
    %131 = arith.mulf %121, %130 : vector<16x8xf32>
    %c1 = arith.constant 1 : index
    %c0_47 = arith.constant 0 : index
    %c0_48 = arith.constant 0 : index
    %132 = vector.load %arg1[%c1, %c0_47, %c0_48] : memref<3x8x32xf32, #tpu.memory_space<vmem>>, vector<1x8x32xf32>
    %133 = vector.shape_cast %132 : vector<1x8x32xf32> to vector<8x32xf32>
    %cst_49 = arith.constant dense<0.000000e+00> : vector<16x32xf32>
    %134 = tpu.matmul %131, %133, %cst_49 {dimension_numbers = #tpu.dot_dimension_numbers<[1], [0], [0], [1], [0, 0, 1, 1], [], []>} : vector<16x8xf32>, vector<8x32xf32>, vector<16x32xf32> -> vector<16x32xf32>
    %c1_50 = arith.constant 1 : index
    %c0_51 = arith.constant 0 : index
    %c0_52 = arith.constant 0 : index
    %135 = vector.load %arg2[%c1_50, %c0_51, %c0_52] : memref<3x1x32xf32, #tpu.memory_space<vmem>>, vector<1x1x32xf32>
    %136 = vector.shape_cast %135 : vector<1x1x32xf32> to vector<1x32xf32>
    %137 = vector.broadcast %136 : vector<1x32xf32> to vector<16x32xf32>
    %138 = arith.addf %134, %137 : vector<16x32xf32>
    %139 = vector.extract_strided_slice %138 {offsets = [0, 0], sizes = [16, 16], strides = [1, 1]} : vector<16x32xf32> to vector<16x16xf32>
    %140 = vector.extract_strided_slice %138 {offsets = [0, 16], sizes = [16, 16], strides = [1, 1]} : vector<16x32xf32> to vector<16x16xf32>
    %141 = arith.negf %140 : vector<16x16xf32>
    %142 = math.exp %141 : vector<16x16xf32>
    %cst_53 = arith.constant 1.000000e+00 : f32
    %143 = vector.broadcast %cst_53 : f32 to vector<16x16xf32>
    %144 = arith.addf %143, %142 : vector<16x16xf32>
    %145 = arith.divf %143, %144 : vector<16x16xf32>
    %146 = arith.mulf %140, %145 : vector<16x16xf32>
    %147 = vector.extract_strided_slice %139 {offsets = [0, 0], sizes = [8, 16], strides = [1, 1]} : vector<16x16xf32> to vector<8x16xf32>
    %148 = vector.extract_strided_slice %139 {offsets = [8, 0], sizes = [8, 16], strides = [1, 1]} : vector<16x16xf32> to vector<8x16xf32>
    %149 = tpu.concatenate %147, %148 in 1 : vector<8x16xf32>, vector<8x16xf32> -> vector<8x32xf32>
    %c1_54 = arith.constant 1 : index
    %c0_55 = arith.constant 0 : index
    %c0_56 = arith.constant 0 : index
    %150 = vector.load %arg3[%c1_54, %c0_55, %c0_56] : memref<3x24x8xf32, #tpu.memory_space<vmem>>, vector<1x24x8xf32>
    %151 = vector.shape_cast %150 : vector<1x24x8xf32> to vector<24x8xf32>
    %cst_57 = arith.constant dense<0.000000e+00> : vector<24x32xf32>
    %152 = tpu.matmul %151, %149, %cst_57 {dimension_numbers = #tpu.dot_dimension_numbers<[1], [0], [0], [1], [0, 0, 1, 1], [], []>} : vector<24x8xf32>, vector<8x32xf32>, vector<24x32xf32> -> vector<24x32xf32>
    %153 = vector.extract_strided_slice %152 {offsets = [0, 0], sizes = [8, 32], strides = [1, 1]} : vector<24x32xf32> to vector<8x32xf32>
    %154 = vector.extract_strided_slice %152 {offsets = [8, 0], sizes = [8, 32], strides = [1, 1]} : vector<24x32xf32> to vector<8x32xf32>
    %155 = vector.extract_strided_slice %152 {offsets = [16, 0], sizes = [8, 32], strides = [1, 1]} : vector<24x32xf32> to vector<8x32xf32>
    %c1_i32_58 = arith.constant 1 : i32
    %156 = tpu.dynamic_rotate %153 by %c1_i32_58 dim 1 : vector<8x32xf32>, i32 -> vector<8x32xf32>
    %cst_59 = arith.constant 0.000000e+00 : f32
    %157 = vector.broadcast %cst_59 : f32 to vector<8x32xf32>
    %158 = arith.select %18, %157, %156 : vector<8x32xi1>, vector<8x32xf32>
    %c31_i32_60 = arith.constant 31 : i32
    %159 = tpu.dynamic_rotate %155 by %c31_i32_60 dim 1 : vector<8x32xf32>, i32 -> vector<8x32xf32>
    %cst_61 = arith.constant 0.000000e+00 : f32
    %160 = vector.broadcast %cst_61 : f32 to vector<8x32xf32>
    %161 = arith.select %20, %160, %159 : vector<8x32xi1>, vector<8x32xf32>
    %162 = arith.addf %158, %154 : vector<8x32xf32>
    %163 = arith.addf %162, %161 : vector<8x32xf32>
    %c1_62 = arith.constant 1 : index
    %c0_63 = arith.constant 0 : index
    %c0_64 = arith.constant 0 : index
    %164 = vector.load %arg4[%c1_62, %c0_63, %c0_64] : memref<3x8x1xf32, #tpu.memory_space<vmem>>, vector<1x8x1xf32>
    %165 = vector.shape_cast %164 : vector<1x8x1xf32> to vector<8x1xf32>
    %166 = vector.broadcast %165 : vector<8x1xf32> to vector<8x32xf32>
    %167 = arith.addf %163, %166 : vector<8x32xf32>
    %168 = vector.extract_strided_slice %167 {offsets = [0, 0], sizes = [8, 16], strides = [1, 1]} : vector<8x32xf32> to vector<8x16xf32>
    %169 = vector.extract_strided_slice %167 {offsets = [0, 16], sizes = [8, 16], strides = [1, 1]} : vector<8x32xf32> to vector<8x16xf32>
    %170 = tpu.concatenate %168, %169 in 0 : vector<8x16xf32>, vector<8x16xf32> -> vector<16x16xf32>
    %171 = arith.negf %170 : vector<16x16xf32>
    %172 = math.exp %171 : vector<16x16xf32>
    %cst_65 = arith.constant 1.000000e+00 : f32
    %173 = vector.broadcast %cst_65 : f32 to vector<16x16xf32>
    %174 = arith.addf %173, %172 : vector<16x16xf32>
    %175 = arith.divf %173, %174 : vector<16x16xf32>
    %176 = arith.mulf %170, %175 : vector<16x16xf32>
    %c1_66 = arith.constant 1 : index
    %c0_67 = arith.constant 0 : index
    %c0_68 = arith.constant 0 : index
    %177 = vector.load %arg5[%c1_66, %c0_67, %c0_68] : memref<3x16x288xf32, #tpu.memory_space<vmem>>, vector<1x16x288xf32>
    %178 = vector.shape_cast %177 : vector<1x16x288xf32> to vector<16x288xf32>
    %cst_69 = arith.constant dense<0.000000e+00> : vector<16x288xf32>
    %179 = tpu.matmul %176, %178, %cst_69 {dimension_numbers = #tpu.dot_dimension_numbers<[1], [0], [0], [1], [0, 0, 1, 1], [], []>} : vector<16x16xf32>, vector<16x288xf32>, vector<16x288xf32> -> vector<16x288xf32>
    %c1_70 = arith.constant 1 : index
    %c0_71 = arith.constant 0 : index
    %c0_72 = arith.constant 0 : index
    %180 = vector.load %arg6[%c1_70, %c0_71, %c0_72] : memref<3x1x288xf32, #tpu.memory_space<vmem>>, vector<1x1x288xf32>
    %181 = vector.shape_cast %180 : vector<1x1x288xf32> to vector<1x288xf32>
    %182 = vector.broadcast %181 : vector<1x288xf32> to vector<16x288xf32>
    %183 = arith.addf %179, %182 : vector<16x288xf32>
    %184 = vector.extract_strided_slice %183 {offsets = [0, 0], sizes = [16, 128], strides = [1, 1]} : vector<16x288xf32> to vector<16x128xf32>
    %185 = vector.extract_strided_slice %183 {offsets = [0, 128], sizes = [16, 128], strides = [1, 1]} : vector<16x288xf32> to vector<16x128xf32>
    %186 = vector.extract_strided_slice %183 {offsets = [0, 256], sizes = [16, 16], strides = [1, 1]} : vector<16x288xf32> to vector<16x16xf32>
    %187 = vector.extract_strided_slice %183 {offsets = [0, 272], sizes = [16, 16], strides = [1, 1]} : vector<16x288xf32> to vector<16x16xf32>
    %cst_73 = arith.constant 0.000000e+00 : f32
    %188 = vector.broadcast %cst_73 : f32 to vector<16x16xf32>
    %189 = arith.maximumf %187, %188 : vector<16x16xf32>
    %190 = vector.broadcast %cst_73 : f32 to vector<16x16xf32>
    %191 = arith.subf %187, %190 : vector<16x16xf32>
    %192 = arith.cmpf one, %191, %191 : vector<16x16xf32>
    %193 = vector.broadcast %cst_73 : f32 to vector<16x16xf32>
    %194 = arith.addf %187, %193 : vector<16x16xf32>
    %195 = math.absf %191 : vector<16x16xf32>
    %cst_74 = arith.constant 0.000000e+00 : f32
    %196 = vector.broadcast %cst_74 : f32 to vector<16x16xf32>
    %197 = arith.subf %196, %195 : vector<16x16xf32>
    %198 = math.exp %197 : vector<16x16xf32>
    %199 = math.log1p %198 : vector<16x16xf32>
    %200 = arith.addf %189, %199 : vector<16x16xf32>
    %201 = arith.select %192, %194, %200 : vector<16x16xi1>, vector<16x16xf32>
    %202 = arith.mulf %185, %184 : vector<16x128xf32>
    %cst_75 = arith.constant dense<0.000000e+00> : vector<16xf32>
    %203 = vector.multi_reduction <add>, %202, %cst_75 [1] : vector<16x128xf32> to vector<16xf32>
    %204 = vector.shape_cast %203 : vector<16xf32> to vector<16x1xf32>
    %205 = arith.mulf %186, %201 : vector<16x16xf32>
    %206 = vector.broadcast %204 : vector<16x1xf32> to vector<16x16xf32>
    %207 = arith.mulf %205, %206 : vector<16x16xf32>
    %208 = arith.negf %207 : vector<16x16xf32>
    %209 = math.exp %208 : vector<16x16xf32>
    %cst_76 = arith.constant 1.000000e+00 : f32
    %210 = vector.broadcast %cst_76 : f32 to vector<16x16xf32>
    %211 = arith.addf %210, %209 : vector<16x16xf32>
    %212 = arith.divf %210, %211 : vector<16x16xf32>
    %213 = arith.mulf %207, %212 : vector<16x16xf32>
    %214 = arith.mulf %213, %146 : vector<16x16xf32>
    %c1_77 = arith.constant 1 : index
    %c0_78 = arith.constant 0 : index
    %c0_79 = arith.constant 0 : index
    %215 = vector.load %arg7[%c1_77, %c0_78, %c0_79] : memref<3x16x8xf32, #tpu.memory_space<vmem>>, vector<1x16x8xf32>
    %216 = vector.shape_cast %215 : vector<1x16x8xf32> to vector<16x8xf32>
    %cst_80 = arith.constant dense<0.000000e+00> : vector<16x8xf32>
    %217 = tpu.matmul %214, %216, %cst_80 {dimension_numbers = #tpu.dot_dimension_numbers<[1], [0], [0], [1], [0, 0, 1, 1], [], []>} : vector<16x16xf32>, vector<16x8xf32>, vector<16x8xf32> -> vector<16x8xf32>
    %c1_81 = arith.constant 1 : index
    %c0_82 = arith.constant 0 : index
    %c0_83 = arith.constant 0 : index
    %218 = vector.load %arg8[%c1_81, %c0_82, %c0_83] : memref<3x1x8xf32, #tpu.memory_space<vmem>>, vector<1x1x8xf32>
    %219 = vector.shape_cast %218 : vector<1x1x8xf32> to vector<1x8xf32>
    %220 = vector.broadcast %219 : vector<1x8xf32> to vector<16x8xf32>
    %221 = arith.addf %217, %220 : vector<16x8xf32>
    %222 = arith.mulf %221, %221 : vector<16x8xf32>
    %cst_84 = arith.constant dense<0.000000e+00> : vector<16xf32>
    %223 = vector.multi_reduction <add>, %222, %cst_84 [1] : vector<16x8xf32> to vector<16xf32>
    %224 = vector.shape_cast %223 : vector<16xf32> to vector<16x1xf32>
    %cst_85 = arith.constant 8.000000e+00 : f32
    %225 = vector.broadcast %cst_85 : f32 to vector<16x1xf32>
    %226 = arith.divf %224, %225 : vector<16x1xf32>
    %cst_86 = arith.constant 9.99999974E-6 : f32
    %227 = vector.broadcast %cst_86 : f32 to vector<16x1xf32>
    %228 = arith.addf %226, %227 : vector<16x1xf32>
    %229 = math.rsqrt %228 : vector<16x1xf32>
    %230 = vector.broadcast %229 : vector<16x1xf32> to vector<16x8xf32>
    %231 = arith.mulf %221, %230 : vector<16x8xf32>
    %c2 = arith.constant 2 : index
    %c0_87 = arith.constant 0 : index
    %c0_88 = arith.constant 0 : index
    %232 = vector.load %arg1[%c2, %c0_87, %c0_88] : memref<3x8x32xf32, #tpu.memory_space<vmem>>, vector<1x8x32xf32>
    %233 = vector.shape_cast %232 : vector<1x8x32xf32> to vector<8x32xf32>
    %cst_89 = arith.constant dense<0.000000e+00> : vector<16x32xf32>
    %234 = tpu.matmul %231, %233, %cst_89 {dimension_numbers = #tpu.dot_dimension_numbers<[1], [0], [0], [1], [0, 0, 1, 1], [], []>} : vector<16x8xf32>, vector<8x32xf32>, vector<16x32xf32> -> vector<16x32xf32>
    %c2_90 = arith.constant 2 : index
    %c0_91 = arith.constant 0 : index
    %c0_92 = arith.constant 0 : index
    %235 = vector.load %arg2[%c2_90, %c0_91, %c0_92] : memref<3x1x32xf32, #tpu.memory_space<vmem>>, vector<1x1x32xf32>
    %236 = vector.shape_cast %235 : vector<1x1x32xf32> to vector<1x32xf32>
    %237 = vector.broadcast %236 : vector<1x32xf32> to vector<16x32xf32>
    %238 = arith.addf %234, %237 : vector<16x32xf32>
    %239 = vector.extract_strided_slice %238 {offsets = [0, 0], sizes = [16, 16], strides = [1, 1]} : vector<16x32xf32> to vector<16x16xf32>
    %240 = vector.extract_strided_slice %238 {offsets = [0, 16], sizes = [16, 16], strides = [1, 1]} : vector<16x32xf32> to vector<16x16xf32>
    %241 = arith.negf %240 : vector<16x16xf32>
    %242 = math.exp %241 : vector<16x16xf32>
    %cst_93 = arith.constant 1.000000e+00 : f32
    %243 = vector.broadcast %cst_93 : f32 to vector<16x16xf32>
    %244 = arith.addf %243, %242 : vector<16x16xf32>
    %245 = arith.divf %243, %244 : vector<16x16xf32>
    %246 = arith.mulf %240, %245 : vector<16x16xf32>
    %247 = vector.extract_strided_slice %239 {offsets = [0, 0], sizes = [8, 16], strides = [1, 1]} : vector<16x16xf32> to vector<8x16xf32>
    %248 = vector.extract_strided_slice %239 {offsets = [8, 0], sizes = [8, 16], strides = [1, 1]} : vector<16x16xf32> to vector<8x16xf32>
    %249 = tpu.concatenate %247, %248 in 1 : vector<8x16xf32>, vector<8x16xf32> -> vector<8x32xf32>
    %c2_94 = arith.constant 2 : index
    %c0_95 = arith.constant 0 : index
    %c0_96 = arith.constant 0 : index
    %250 = vector.load %arg3[%c2_94, %c0_95, %c0_96] : memref<3x24x8xf32, #tpu.memory_space<vmem>>, vector<1x24x8xf32>
    %251 = vector.shape_cast %250 : vector<1x24x8xf32> to vector<24x8xf32>
    %cst_97 = arith.constant dense<0.000000e+00> : vector<24x32xf32>
    %252 = tpu.matmul %251, %249, %cst_97 {dimension_numbers = #tpu.dot_dimension_numbers<[1], [0], [0], [1], [0, 0, 1, 1], [], []>} : vector<24x8xf32>, vector<8x32xf32>, vector<24x32xf32> -> vector<24x32xf32>
    %253 = vector.extract_strided_slice %252 {offsets = [0, 0], sizes = [8, 32], strides = [1, 1]} : vector<24x32xf32> to vector<8x32xf32>
    %254 = vector.extract_strided_slice %252 {offsets = [8, 0], sizes = [8, 32], strides = [1, 1]} : vector<24x32xf32> to vector<8x32xf32>
    %255 = vector.extract_strided_slice %252 {offsets = [16, 0], sizes = [8, 32], strides = [1, 1]} : vector<24x32xf32> to vector<8x32xf32>
    %c1_i32_98 = arith.constant 1 : i32
    %256 = tpu.dynamic_rotate %253 by %c1_i32_98 dim 1 : vector<8x32xf32>, i32 -> vector<8x32xf32>
    %cst_99 = arith.constant 0.000000e+00 : f32
    %257 = vector.broadcast %cst_99 : f32 to vector<8x32xf32>
    %258 = arith.select %18, %257, %256 : vector<8x32xi1>, vector<8x32xf32>
    %c31_i32_100 = arith.constant 31 : i32
    %259 = tpu.dynamic_rotate %255 by %c31_i32_100 dim 1 : vector<8x32xf32>, i32 -> vector<8x32xf32>
    %cst_101 = arith.constant 0.000000e+00 : f32
    %260 = vector.broadcast %cst_101 : f32 to vector<8x32xf32>
    %261 = arith.select %20, %260, %259 : vector<8x32xi1>, vector<8x32xf32>
    %262 = arith.addf %258, %254 : vector<8x32xf32>
    %263 = arith.addf %262, %261 : vector<8x32xf32>
    %c2_102 = arith.constant 2 : index
    %c0_103 = arith.constant 0 : index
    %c0_104 = arith.constant 0 : index
    %264 = vector.load %arg4[%c2_102, %c0_103, %c0_104] : memref<3x8x1xf32, #tpu.memory_space<vmem>>, vector<1x8x1xf32>
    %265 = vector.shape_cast %264 : vector<1x8x1xf32> to vector<8x1xf32>
    %266 = vector.broadcast %265 : vector<8x1xf32> to vector<8x32xf32>
    %267 = arith.addf %263, %266 : vector<8x32xf32>
    %268 = vector.extract_strided_slice %267 {offsets = [0, 0], sizes = [8, 16], strides = [1, 1]} : vector<8x32xf32> to vector<8x16xf32>
    %269 = vector.extract_strided_slice %267 {offsets = [0, 16], sizes = [8, 16], strides = [1, 1]} : vector<8x32xf32> to vector<8x16xf32>
    %270 = tpu.concatenate %268, %269 in 0 : vector<8x16xf32>, vector<8x16xf32> -> vector<16x16xf32>
    %271 = arith.negf %270 : vector<16x16xf32>
    %272 = math.exp %271 : vector<16x16xf32>
    %cst_105 = arith.constant 1.000000e+00 : f32
    %273 = vector.broadcast %cst_105 : f32 to vector<16x16xf32>
    %274 = arith.addf %273, %272 : vector<16x16xf32>
    %275 = arith.divf %273, %274 : vector<16x16xf32>
    %276 = arith.mulf %270, %275 : vector<16x16xf32>
    %c2_106 = arith.constant 2 : index
    %c0_107 = arith.constant 0 : index
    %c0_108 = arith.constant 0 : index
    %277 = vector.load %arg5[%c2_106, %c0_107, %c0_108] : memref<3x16x288xf32, #tpu.memory_space<vmem>>, vector<1x16x288xf32>
    %278 = vector.shape_cast %277 : vector<1x16x288xf32> to vector<16x288xf32>
    %cst_109 = arith.constant dense<0.000000e+00> : vector<16x288xf32>
    %279 = tpu.matmul %276, %278, %cst_109 {dimension_numbers = #tpu.dot_dimension_numbers<[1], [0], [0], [1], [0, 0, 1, 1], [], []>} : vector<16x16xf32>, vector<16x288xf32>, vector<16x288xf32> -> vector<16x288xf32>
    %c2_110 = arith.constant 2 : index
    %c0_111 = arith.constant 0 : index
    %c0_112 = arith.constant 0 : index
    %280 = vector.load %arg6[%c2_110, %c0_111, %c0_112] : memref<3x1x288xf32, #tpu.memory_space<vmem>>, vector<1x1x288xf32>
    %281 = vector.shape_cast %280 : vector<1x1x288xf32> to vector<1x288xf32>
    %282 = vector.broadcast %281 : vector<1x288xf32> to vector<16x288xf32>
    %283 = arith.addf %279, %282 : vector<16x288xf32>
    %284 = vector.extract_strided_slice %283 {offsets = [0, 0], sizes = [16, 128], strides = [1, 1]} : vector<16x288xf32> to vector<16x128xf32>
    %285 = vector.extract_strided_slice %283 {offsets = [0, 128], sizes = [16, 128], strides = [1, 1]} : vector<16x288xf32> to vector<16x128xf32>
    %286 = vector.extract_strided_slice %283 {offsets = [0, 256], sizes = [16, 16], strides = [1, 1]} : vector<16x288xf32> to vector<16x16xf32>
    %287 = vector.extract_strided_slice %283 {offsets = [0, 272], sizes = [16, 16], strides = [1, 1]} : vector<16x288xf32> to vector<16x16xf32>
    %cst_113 = arith.constant 0.000000e+00 : f32
    %288 = vector.broadcast %cst_113 : f32 to vector<16x16xf32>
    %289 = arith.maximumf %287, %288 : vector<16x16xf32>
    %290 = vector.broadcast %cst_113 : f32 to vector<16x16xf32>
    %291 = arith.subf %287, %290 : vector<16x16xf32>
    %292 = arith.cmpf one, %291, %291 : vector<16x16xf32>
    %293 = vector.broadcast %cst_113 : f32 to vector<16x16xf32>
    %294 = arith.addf %287, %293 : vector<16x16xf32>
    %295 = math.absf %291 : vector<16x16xf32>
    %cst_114 = arith.constant 0.000000e+00 : f32
    %296 = vector.broadcast %cst_114 : f32 to vector<16x16xf32>
    %297 = arith.subf %296, %295 : vector<16x16xf32>
    %298 = math.exp %297 : vector<16x16xf32>
    %299 = math.log1p %298 : vector<16x16xf32>
    %300 = arith.addf %289, %299 : vector<16x16xf32>
    %301 = arith.select %292, %294, %300 : vector<16x16xi1>, vector<16x16xf32>
    %302 = arith.mulf %285, %284 : vector<16x128xf32>
    %cst_115 = arith.constant dense<0.000000e+00> : vector<16xf32>
    %303 = vector.multi_reduction <add>, %302, %cst_115 [1] : vector<16x128xf32> to vector<16xf32>
    %304 = vector.shape_cast %303 : vector<16xf32> to vector<16x1xf32>
    %305 = arith.mulf %286, %301 : vector<16x16xf32>
    %306 = vector.broadcast %304 : vector<16x1xf32> to vector<16x16xf32>
    %307 = arith.mulf %305, %306 : vector<16x16xf32>
    %308 = arith.negf %307 : vector<16x16xf32>
    %309 = math.exp %308 : vector<16x16xf32>
    %cst_116 = arith.constant 1.000000e+00 : f32
    %310 = vector.broadcast %cst_116 : f32 to vector<16x16xf32>
    %311 = arith.addf %310, %309 : vector<16x16xf32>
    %312 = arith.divf %310, %311 : vector<16x16xf32>
    %313 = arith.mulf %307, %312 : vector<16x16xf32>
    %314 = arith.mulf %313, %246 : vector<16x16xf32>
    %c2_117 = arith.constant 2 : index
    %c0_118 = arith.constant 0 : index
    %c0_119 = arith.constant 0 : index
    %315 = vector.load %arg7[%c2_117, %c0_118, %c0_119] : memref<3x16x8xf32, #tpu.memory_space<vmem>>, vector<1x16x8xf32>
    %316 = vector.shape_cast %315 : vector<1x16x8xf32> to vector<16x8xf32>
    %cst_120 = arith.constant dense<0.000000e+00> : vector<16x8xf32>
    %317 = tpu.matmul %314, %316, %cst_120 {dimension_numbers = #tpu.dot_dimension_numbers<[1], [0], [0], [1], [0, 0, 1, 1], [], []>} : vector<16x16xf32>, vector<16x8xf32>, vector<16x8xf32> -> vector<16x8xf32>
    %c2_121 = arith.constant 2 : index
    %c0_122 = arith.constant 0 : index
    %c0_123 = arith.constant 0 : index
    %318 = vector.load %arg8[%c2_121, %c0_122, %c0_123] : memref<3x1x8xf32, #tpu.memory_space<vmem>>, vector<1x1x8xf32>
    %319 = vector.shape_cast %318 : vector<1x1x8xf32> to vector<1x8xf32>
    %320 = vector.broadcast %319 : vector<1x8xf32> to vector<16x8xf32>
    %321 = arith.addf %317, %320 : vector<16x8xf32>
    %c0_124 = arith.constant 0 : index
    %c0_125 = arith.constant 0 : index
    %322 = vector.load %arg9[%c0_124, %c0_125] : memref<16x8xf32, #tpu.memory_space<vmem>>, vector<16x8xf32>
    tpu.vector_store %arg9[%c0_124, %c0_125], %321 {strides = array<i32>} : memref<16x8xf32, #tpu.memory_space<vmem>>, vector<16x8xf32>,
    return
  }
}

</mosaic_0001>

<bundles_post_ra>
// kernel: mamba_forward.1
= control target key start
LH: loop header
LB: loop body
LE: loop exit
PB: predicated region body
PF: predicated region fallthrough
CT: control target
= control target key end

     0   :  { %vm53_vm0 = vcmask 64512   ;;  %s2791_s0 = inlined_call_operand.vmem [shape: f32[16,8], index: 0, kind: input, shape index: {}]   ;;  %s2792_s1 = inlined_call_operand.vmem [shape: f32[3,8,32], index: 1, kind: input, shape index: {}]   ;;  %s2793_s2 = inlined_call_operand.vmem [shape: f32[3,1,32], index: 2, kind: input, shape index: {}]   ;;  %s2794_s3 = inlined_call_operand.vmem [shape: f32[3,24,8], index: 3, kind: input, shape index: {}]   ;;  %s2795_s4 = inlined_call_operand.vmem [shape: f32[3,8,1], index: 4, kind: input, shape index: {}]   ;;  %s2796_s5 = inlined_call_operand.vmem [shape: f32[3,16,288], index: 5, kind: input, shape index: {}]   ;;  %s2797_s6 = inlined_call_operand.vmem [shape: f32[3,1,288], index: 6, kind: input, shape index: {}]   ;;  %s2798_s7 = inlined_call_operand.vmem [shape: f32[3,16,8], index: 7, kind: input, shape index: {}]   ;;  %s2799_s8 = inlined_call_operand.vmem [shape: f32[3,1,8], index: 8, kind: input, shape index: {}]   ;;  %s2800_s9 = inlined_call_operand.hbm [shape: f32[16,8], index: 9, kind: output, shape index: {}]  }
   0x1   :  { %v49_v0 = vld [vmem:[%s2791_s0] sm:$0xff]  ;;  %v50_v1 = vld [vmem:[%s2791_s0 + $0x8] sm:$0xff] }
   0x2   :  { %14 = vsyncpa [#allocation3], 0  ;;  %v51_v2 = vmul.f32 %v49_v0, %v49_v0  ;;  %v52_v3 = vmul.f32 %v50_v1, %v50_v1  ;;  %v69_v6 = vld [vmem:[%s2792_s1] sm:$0xff]  ;;  %v2336_v17 = vmov 0.0   ;;  %vm2337_vm1 = vmmov 0   ;;  %s2338_s16 = smov 16  }
   0x3   :  { %2065 = vmatprep.subr.mxu0 %v69_v6  ;;  %2070 = vmatprep.subr.mxu1 %v2336_v17  ;;  %v1931_v18 = vld [vmem:[%s2793_s2] ss:$0 sm:$0xff]  ;;  %vm176_vm2 = vcmask 130048   ;;  %v179_v26 = vld [vmem:[%s2794_s3 + $0x8] sm:$0xff]  ;;  %v180_v27 = vld [vmem:[%s2794_s3 + $0x10] sm:$0xff]  ;;  %v2339_v28 = vmov 0   ;;  %v33_v50 = vlaneseq }
   0x4   :  { %v54_v4 = vsel %vm53_vm0, %v51_v2, 0.0  ;;  %v57_v5 = vsel %vm53_vm0, %v52_v3, 0.0  ;;  %2066 = vmatpush3.msra.mxu0 %v69_v6  ;;  %2072 = vmatprep.mubr.msk.f32.mxu1 %vm2337_vm1, %v2336_v17  ;;  %v178_v24 = vld [vmem:[%s2794_s3] sm:$0xff]  ;;  %s2340_s23 = smov 32   ;;  %vm270_vm3 = vcmask 1047808   ;;  %s2341_s26 = smov 97  }
   0x5   :  { %55 = vadd.xlane.f32.xlu0 %v54_v4  ;;  %2202 = vset.pattern.permute.xlu1 %v2339_v28  ;;  %v295_v39 = vld [vmem:[%s2795_s4] sm:$0xff]  ;;  %s2342_s27 = smov 127   ;;  %v321_v44 = vld [vmem:[%s2796_s5 + $0x8] sm:$0xff]  ;;  %v323_v48 = vld [vmem:[%s2796_s5 + $0x18] sm:$0xff]  ;;  %v34_v51 = vand.u32 127, %v33_v50  ;;  %s2343_s0 = smov 112  }
   0x6   :  { %2203 = vset.pattern.permute.xlu0 %v2339_v28  ;;  %v324_v45 = vld [vmem:[%s2796_s5 + $0x20] sm:$0xff]  ;;  %v325_v2 = vld [vmem:[%s2796_s5 + $0x28] sm:$0xff]  ;;  %s2344_s10 = smov [#allocation2]  }
   0x7   :  { %v2155_v46 = vpack.c.bf16 %v324_v45, %v321_v44  ;;  %v320_v47 = vld [vmem:[%s2796_s5] sm:$0xff]  ;;  %v39_v53 = vand.u32 15, %v34_v51  ;;  %v2006_v55 = vld [vmem:[%s2796_s5 + $0x88] sm:$0xff]  ;;  %s1920_s11 = sshll.u32 %s2344_s10, 4  ;;  %s1921_s11 = int_to_ptr.vmem [resolvable:$true] %s1920_s11 }
   0x8   :  { %v2157_v49 = vpack.c.bf16 %v323_v48, %v320_v47  ;;  %s2312_s12 = scalar_lea.vmem %s1921_s11, 256  ;;  %p2317_p1 = scmp.lt.s32.totalorder %s1921_s11, %s1921_s11 }
   0x9   :  { %58 = vadd.xlane.f32.xlu0 %v57_v5  ;;  %2156 = vmatprep.subr.bf16.mxu0 %v2155_v46  ;;  %vm2466_vm4 = vcmp.eq.s32.totalorder %v39_v53, 0  ;;  %vm2472_vm5 = vcmp.eq.s32.totalorder %v39_v53, 15  ;;  %p2313_p0 = scmp.ne.s32.totalorder %s1921_s11, %s2312_s12  ;;  %p2318_p2 = scmp.lt.s32.totalorder %s2312_s12, %s2312_s12 }
   0xb   :  { %p2319_p3 = por %p2318_p2, %p2317_p1 }
   0xd   :  { %p2320_p4 = pnand %p2319_p3, %p2313_p0 }
  0x92   :  { %v56_v7 = vpop.xlane.xlu0 %55 }
  0x93   :  { %v61_v8 = vmul.f32 0.125, %v56_v7 }
  0x95   :  { %v63_v9 = vadd.f32 1e-05, %v61_v8 }
  0x96   :  { %v59_v10 = vpop.xlane.xlu0 %58 }
  0x97   :  { %2204 = vrsqrt.f32 %v63_v9  ;;  %v62_v11 = vmul.f32 0.125, %v59_v10 }
  0x99   :  { %v64_v12 = vadd.f32 1e-05, %v62_v11 }
  0x9b   :  { %2206 = vrsqrt.f32 %v64_v12 }
  0xa1   :  { %v2205_v13 = vpop.eup %2204 }
  0xa2   :  { %v67_v14 = vmul.f32 %v2205_v13, %v49_v0  ;;  %v329_v13 = vshrl.u32 %v33_v50, 7 }
  0xa4   :  { %2067 = vmatprep.mubr.msk.f32.mxu0 %vm53_vm0, %v67_v14  ;;  %v2490_v14 = vsub.s32 0, %v329_v13 }
  0xa5   :  { %v2207_v15 = vpop.eup %2206 }
  0xa6   :  { %v68_v16 = vmul.f32 %v2207_v15, %v50_v1  ;;  %v322_v1 = vld [vmem:[%s2796_s5 + $0x10] sm:$0xff]  ;;  %v326_v15 = vld [vmem:[%s2797_s6] sm:$0x7] }
  0xa7   :  { %v2159_v4 = vpack.c.bf16 %v325_v2, %v322_v1 }
  0xa8   :  { %2068 = vmatmul.mubr.msk.f32.vlgmr.msra.gmra.mrb[0].mxu0 %vm53_vm0, %v68_v16  ;;  %v2495_v16 = vsub.s32 1, %v329_v13 }
  0xa9   :  { %413 = vmatprep.mubr.f32.mxu0 %v2336_v17  ;;  %2158 = vmatpush1.bf16.msra.mxu0 %v2157_v49 }
  0xaa   :  { %2160 = vmatprep.subr.bf16.mxu0 %v2159_v4 }
 0x17b   :  { %v2069_v19 = vpop.f32.mrb[0].mxu0 }
 0x17c   :  { %v2417_v20 = vadd.f32 %v2069_v19, %v1931_v18  ;;  %v149_v21 = vpop.f32.mrb[1].mxu0  ;;  %v335_v19 = vrot.slane %v326_v15, %v2495_v16 }
 0x17d   :  { %v2419_v22 = vadd.f32 %v1931_v18, %v149_v21  ;;  %v331_v18 = vrot.slane %v326_v15, %v2490_v14 }
 0x17e   :  { %173 = vrot.lane.b32.xlu1 %v2417_v20, %s2338_s16 }
 0x17f   :  { %v1934_v44 = vmul.f32 -1.442695, %v2419_v22 }
 0x1f0   :  { %v174_v23 = vpop.permute.xlu1 %173 }
 0x1f1   :  { %v177_v25 = vsel %vm176_vm2, %v2419_v22, %v174_v23 }
 0x1f2   :  { %2071 = vmatpush3.msra.mxu1 %v177_v25 }
 0x1f3   :  { %2073 = vmatmul.mubr.msk.f32.vlgmr.msra.gmra.mrb[0].mxu1 %vm53_vm0, %v178_v24 }
 0x1f4   :  { %2075 = vmatprep.mubr.msk.f32.mxu1 %vm2337_vm1, %v2336_v17 }
 0x1f7   :  { %2076 = vmatmul.mubr.msk.f32.gmra.mrb[2].mxu1 %vm53_vm0, %v179_v26 }
 0x1f8   :  { %2078 = vmatprep.mubr.msk.f32.mxu1 %vm2337_vm1, %v2336_v17 }
 0x1fb   :  { %2079 = vmatmul.mubr.msk.f32.gmra.mrb[4].mxu1 %vm53_vm0, %v180_v27  ;;  %v2499_v27 = vsub.s32 2, %v329_v13 }
 0x2c6   :  { %v256_v29 = vpop.f32.mrb[0].mxu1 }
 0x2c7   :  { %271 = vrot.lane.b32.xlu1 %v256_v29, %s2340_s23  ;;  %v2074_v30 = vpop.f32.mrb[1].mxu1 }
 0x2ca   :  { %v261_v31 = vpop.f32.mrb[2].mxu1 }
 0x2cb   :  { %v2077_v32 = vpop.f32.mrb[3].mxu1 }
 0x2ce   :  { %v266_v33 = vpop.f32.mrb[4].mxu1 }
 0x2cf   :  { %282 = vrot.lane.b32.xlu0 %v266_v33, %s2340_s23  ;;  %v2080_v34 = vpop.f32.mrb[5].mxu1 }
 0x339   :  { %v272_v35 = vpop.permute.xlu1 %271 }
 0x33a   :  { %v273_v36 = vsel %vm270_vm3, %v272_v35, %v256_v29 }
 0x33b   :  { %274 = vrot.lane.b32.xlu1 %v273_v36, %s2340_s23 }
 0x341   :  { %v283_v37 = vpop.permute.xlu0 %282 }
 0x342   :  { %v284_v38 = vsel %vm270_vm3, %v283_v37, %v266_v33 }
 0x343   :  { %285 = vrot.lane.b32.xlu1 %v284_v38, %s2340_s23 }
 0x347   :  { %298 = vperm.xlu1 %2202, %v295_v39  }
 0x3ad   :  { %v275_v40 = vpop.permute.xlu1 %274 }
 0x3ae   :  { %v276_v41 = vsel %vm270_vm3, %v275_v40, %v256_v29 }
 0x3af   :  { %278 = vrot.lane.b32.xlu1 %v276_v41, %s2341_s26 }
 0x3b5   :  { %v286_v42 = vpop.permute.xlu1 %285 }
 0x3b6   :  { %v287_v43 = vsel %vm270_vm3, %v286_v42, %v266_v33  ;;  %v1935_v42 = vmul.f32 -1.442695, %v2417_v20 }
 0x3b7   :  { %289 = vrot.lane.b32.xlu1 %v287_v43, %s2342_s27 }
 0x3c6   :  { %v299_v52 = vpop.permute.xlu1 %298 }
 0x421   :  { %v279_v54 = vpop.permute.xlu1 %278 }
 0x422   :  { %v281_v56 = vsel %vm2466_vm4, 0.0, %v279_v54 }
 0x423   :  { %v293_v58 = vadd.f32 %v281_v56, %v261_v31  ;;  %v339_v31 = vrot.slane %v326_v15, %v2499_v27 }
 0x429   :  { %v290_v59 = vpop.permute.xlu1 %289 }
 0x42a   :  { %v292_v60 = vsel %vm2472_vm5, 0.0, %v290_v59 }
 0x42b   :  { %v294_v61 = vadd.f32 %v293_v58, %v292_v60 }
 0x42d   :  { %v301_v62 = vadd.f32 %v299_v52, %v294_v61 }
 0x42f   :  { %v1939_v63 = vmul.f32 -1.442695, %v301_v62  ;;  %303 = vrot.lane.b32.xlu1 %v301_v62, %s2343_s0 }
 0x431   :  { %2208 = vpow2.f32 %v1939_v63 }
 0x43b   :  { %v2209_v0 = vpop.eup %2208 }
 0x43c   :  { %v312_v3 = vadd.f32 1.0, %v2209_v0 }
 0x43e   :  { %2210 = vrcp.f32 %v312_v3 }
 0x448   :  { %v2211_v5 = vpop.eup %2210 }
 0x449   :  { %v318_v6 = vmul.f32 %v2211_v5, %v301_v62 }
 0x44b   :  { %1941 = vmatmul.mubr.msk.f32.vlgmr.msra.gmra.mrb[2].mxu0 %vm176_vm2, %v318_v6 }
 0x44c   :  { %419 = vmatprep.mubr.f32.mxu0 %v2336_v17  ;;  %2162 = vmatpush3.bf16.msra.mxu0 %v2159_v4 }
 0x4a1   :  { %v304_v7 = vpop.permute.xlu1 %303 }
 0x4a2   :  { %v1940_v8 = vmul.f32 -1.442695, %v304_v7 }
 0x4a4   :  { %2212 = vpow2.f32 %v1940_v8 }
 0x4ae   :  { %v2213_v9 = vpop.eup %2212 }
 0x4af   :  { %v313_v10 = vadd.f32 1.0, %v2213_v9 }
 0x4b1   :  { %2214 = vrcp.f32 %v313_v10 }
 0x4bb   :  { %v2215_v11 = vpop.eup %2214 }
 0x4bc   :  { %v319_v12 = vmul.f32 %v2215_v11, %v304_v7 }
 0x4be   :  { %1942 = vmatmul.mubr.msk.f32.gmra.mrb[4].mxu0 %vm176_vm2, %v319_v12 }
 0x4bf   :  { %2085 = vmatprep.mubr.msk.f32.mxu0 %vm176_vm2, %v318_v6 }
 0x4c2   :  { %2086 = vmatmul.mubr.msk.f32.vlgmr.msra.gmra.mrb[6].mxu0 %vm176_vm2, %v319_v12 }
 0x51e   :  { %v415_v21 = vpop.f32.mrb[2].mxu0 }
 0x51f   :  { %v416_v23 = vadd.f32 %v415_v21, %v331_v18  ;;  %v417_v24 = vpop.f32.mrb[3].mxu0  ;;  %v580_v21 = vld [vmem:[%s2798_s7 + $0x8] sm:$0xff] }
 0x520   :  { %v418_v25 = vadd.f32 %v417_v24, %v335_v19 }
 0x522   :  { %v537_v26 = vmul.f32 %v418_v25, %v416_v23 }
 0x524   :  { %539 = vadd.xlane.f32.xlu0 %v537_v26 }
 0x591   :  { %v421_v28 = vpop.f32.mrb[4].mxu0 }
 0x592   :  { %v422_v29 = vadd.f32 %v421_v28, %v331_v18  ;;  %v423_v30 = vpop.f32.mrb[5].mxu0 }
 0x593   :  { %v424_v32 = vadd.f32 %v423_v30, %v335_v19  ;;  %v579_v19 = vld [vmem:[%s2798_s7] sm:$0xff] }
 0x594   :  { %v2163_v23 = vpack.c.bf16 %v580_v21, %v579_v19 }
 0x595   :  { %v2087_v33 = vpop.f32.mrb[6].mxu0  ;;  %v538_v34 = vmul.f32 %v424_v32, %v422_v29 }
 0x596   :  { %v2502_v35 = vadd.f32 %v2087_v33, %v339_v31  ;;  %v492_v36 = vpop.f32.mrb[7].mxu0  ;;  %2164 = vmatprep.subr.bf16.mxu1 %v2163_v23 }
 0x597   :  { %v2504_v37 = vadd.f32 %v492_v36, %v339_v31  ;;  %541 = vadd.xlane.f32.xlu1 %v538_v34  ;;  %2166 = vmatpush3.bf16.msra.mxu1 %v2163_v23 }
 0x598   :  { %v508_v38 = vand.u32 2147483647, %v2502_v35  ;;  %v502_v2 = vmax.f32 %v2502_v35, 0.0  ;;  %vm504_vm8 = vcmp.ne.f32.partialorder %v2502_v35, %v2502_v35  ;;  %2100 = vmatprep.subr.mxu1 %v2336_v17 }
 0x599   :  { %v507_v39 = vand.u32 2147483647, %v2504_v37  ;;  %v501_v6 = vmax.f32 %v2504_v37, 0.0  ;;  %vm503_vm9 = vcmp.ne.f32.partialorder %v2504_v37, %v2504_v37 }
 0x59a   :  { %v510_v40 = vsub.f32 0.0, %v508_v38 }
 0x59b   :  { %v509_v41 = vsub.f32 0.0, %v507_v39 }
 0x59c   :  { %v513_v43 = vmul.f32 1.442695, %v510_v40 }
 0x59d   :  { %v511_v45 = vmul.f32 1.442695, %v509_v41 }
 0x59e   :  { %2216 = vpow2.f32 %v513_v43 }
 0x59f   :  { %2218 = vpow2.f32 %v511_v45  ;;  %v1947_v45 = vld [vmem:[%s2799_s8] ss:$0 sm:$0xff] }
 0x5a0   :  { %2220 = vpow2.f32 %v1935_v42 }
 0x5a1   :  { %2222 = vpow2.f32 %v1934_v44 }
 0x5a8   :  { %v2217_v46 = vpop.eup %2216 }
 0x5a9   :  { %v2219_v47 = vpop.eup %2218  ;;  %v524_v48 = vadd.f32 1.0, %v2217_v46  ;;  %v527_v54 = vmul.f32 -0.5, %v2217_v46  ;;  %v530_v59 = vand.u32 2147483647, %v2217_v46 }
 0x5aa   :  { %v2221_v49 = vpop.eup %2220  ;;  %v515_v50 = vadd.f32 1.0, %v2219_v47  ;;  %v518_v56 = vmul.f32 -0.5, %v2219_v47  ;;  %v521_v61 = vand.u32 2147483647, %v2219_v47 }
 0x5ab   :  { %v2223_v51 = vpop.eup %2222  ;;  %2224 = vlog2.f32 %v524_v48  ;;  %v165_v52 = vadd.f32 1.0, %v2221_v49  ;;  %v528_v58 = vadd.f32 1.0, %v527_v54  ;;  %vm531_vm6 = vcmp.lt.f32.partialorder %v530_v59, 0.0004427343  ;;  %v1950_v54 = vld [vmem:[%s2792_s1 + $0x8] sm:$0xff] }
 0x5ac   :  { %2226 = vlog2.f32 %v515_v50  ;;  %v164_v53 = vadd.f32 1.0, %v2223_v51  ;;  %v519_v60 = vadd.f32 1.0, %v518_v56  ;;  %vm522_vm7 = vcmp.lt.f32.partialorder %v521_v61, 0.0004427343  ;;  %2095 = vmatprep.subr.mxu0 %v1950_v54 }
 0x5ad   :  { %2228 = vrcp.f32 %v165_v52  ;;  %v529_v1 = vmul.f32 %v2217_v46, %v528_v58  ;;  %2096 = vmatpush3.msra.mxu0 %v1950_v54 }
 0x5ae   :  { %2230 = vrcp.f32 %v164_v53  ;;  %v520_v4 = vmul.f32 %v2219_v47, %v519_v60 }
 0x5b1   :  { %v540_v24 = vpop.xlane.xlu0 %539 }
 0x5b5   :  { %v2225_v62 = vpop.eup %2224 }
 0x5b6   :  { %v2227_v63 = vpop.eup %2226  ;;  %v526_v0 = vmul.f32 0.6931472, %v2225_v62 }
 0x5b7   :  { %v517_v3 = vmul.f32 0.6931472, %v2227_v63  ;;  %v2229_v10 = vpop.eup %2228 }
 0x5b8   :  { %v532_v5 = vsel %vm531_vm6, %v529_v1, %v526_v0  ;;  %v2231_v12 = vpop.eup %2230  ;;  %v171_v15 = vmul.f32 %v2229_v10, %v2417_v20 }
 0x5b9   :  { %v534_v7 = vadd.f32 %v532_v5, %v502_v2  ;;  %v523_v8 = vsel %vm522_vm7, %v520_v4, %v517_v3  ;;  %v170_v18 = vmul.f32 %v2231_v12, %v2419_v22  ;;  %v1952_v3 = vld [vmem:[%s2793_s2 + $0x1] ss:$0 sm:$0xff]  ;;  %v1959_v12 = vld [vmem:[%s2794_s3 + $0x28] sm:$0xff] }
 0x5ba   :  { %v533_v9 = vadd.f32 %v523_v8, %v501_v6 }
 0x5bb   :  { %v536_v11 = vsel %vm504_vm8, %v2502_v35, %v534_v7 }
 0x5bc   :  { %547 = vrot.lane.b32.xlu1 %v536_v11, %s2343_s0  ;;  %v535_v13 = vsel %vm503_vm9, %v2504_v37, %v533_v9  ;;  %v1957_v9 = vld [vmem:[%s2794_s3 + $0x18] sm:$0xff]  ;;  %v1958_v11 = vld [vmem:[%s2794_s3 + $0x20] sm:$0xff] }
 0x5bd   :  { %545 = vrot.lane.b32.xlu0 %v535_v13, %s2343_s0 }
 0x5c0   :  { %573 = vrot.lane.b32.xlu1 %v171_v15, %s2343_s0 }
 0x5c1   :  { %571 = vrot.lane.b32.xlu0 %v170_v18, %s2343_s0 }
 0x624   :  { %v542_v20 = vpop.xlane.xlu1 %541 }
 0x62e   :  { %v548_v22 = vpop.permute.xlu1 %547 }
 0x62f   :  { %v552_v25 = vmul.f32 %v548_v22, %v2502_v35  ;;  %v546_v26 = vpop.permute.xlu0 %545  ;;  %v1963_v22 = vld [vmem:[%s2795_s4 + $0x8] sm:$0xff] }
 0x630   :  { %v551_v28 = vmul.f32 %v546_v26, %v2504_v37 }
 0x631   :  { %v554_v29 = vmul.f32 %v552_v25, %v542_v20 }
 0x632   :  { %v553_v30 = vmul.f32 %v551_v28, %v540_v24  ;;  %v574_v43 = vpop.permute.xlu1 %573 }
 0x633   :  { %v1946_v31 = vmul.f32 -1.442695, %v554_v29  ;;  %v572_v35 = vpop.permute.xlu0 %571 }
 0x634   :  { %v1945_v32 = vmul.f32 -1.442695, %v553_v30 }
 0x635   :  { %2232 = vpow2.f32 %v1946_v31 }
 0x636   :  { %2234 = vpow2.f32 %v1945_v32  ;;  %v1967_v32 = vld [vmem:[%s2796_s5 + $0x38] sm:$0xff] }
 0x63f   :  { %v2233_v33 = vpop.eup %2232 }
 0x640   :  { %v2235_v34 = vpop.eup %2234  ;;  %v562_v36 = vadd.f32 1.0, %v2233_v33  ;;  %v1970_v33 = vld [vmem:[%s2796_s5 + $0x50] sm:$0xff] }
 0x641   :  { %v561_v38 = vadd.f32 1.0, %v2235_v34  ;;  %v2167_v34 = vpack.c.bf16 %v1970_v33, %v1967_v32 }
 0x642   :  { %2236 = vrcp.f32 %v562_v36  ;;  %v1966_v36 = vld [vmem:[%s2796_s5 + $0x30] sm:$0xff] }
 0x643   :  { %2238 = vrcp.f32 %v561_v38  ;;  %v1969_v38 = vld [vmem:[%s2796_s5 + $0x48] sm:$0xff]  ;;  %2168 = vmatprep.subr.bf16.mxu0 %v2167_v34 }
 0x64c   :  { %v2237_v39 = vpop.eup %2236 }
 0x64d   :  { %v2239_v40 = vpop.eup %2238  ;;  %v568_v41 = vmul.f32 %v2237_v39, %v554_v29  ;;  %v2169_v39 = vpack.c.bf16 %v1969_v38, %v1966_v36 }
 0x64e   :  { %v567_v42 = vmul.f32 %v2239_v40, %v553_v30 }
 0x64f   :  { %v578_v37 = vmul.f32 %v574_v43, %v568_v41 }
 0x650   :  { %v577_v44 = vmul.f32 %v572_v35, %v567_v42 }
 0x652   :  { %2092 = vmatprep.mubr.msk.f32.mxu1 %vm176_vm2, %v577_v44 }
 0x653   :  { %2093 = vmatmul.mubr.msk.f32.vlgmr.msra.gmra.mrb[6].mxu1 %vm176_vm2, %v578_v37 }
 0x654   :  { %2102 = vmatprep.mubr.msk.f32.mxu1 %vm2337_vm1, %v2336_v17 }
 0x726   :  { %v2094_v46 = vpop.f32.mrb[6].mxu1 }
 0x727   :  { %v666_v47 = vadd.f32 %v2094_v46, %v1947_v45  ;;  %v660_v48 = vpop.f32.mrb[7].mxu1 }
 0x728   :  { %v661_v49 = vadd.f32 %v1947_v45, %v660_v48  ;;  %v1968_v48 = vld [vmem:[%s2796_s5 + $0x40] sm:$0xff] }
 0x729   :  { %v670_v50 = vmul.f32 %v666_v47, %v666_v47 }
 0x72a   :  { %v669_v51 = vmul.f32 %v661_v49, %v661_v49 }
 0x72b   :  { %v674_v52 = vsel %vm53_vm0, %v670_v50, 0.0 }
 0x72c   :  { %675 = vadd.xlane.f32.xlu1 %v674_v52  ;;  %v671_v53 = vsel %vm53_vm0, %v669_v51, 0.0 }
 0x72d   :  { %672 = vadd.xlane.f32.xlu0 %v671_v53 }
 0x7b9   :  { %v676_v56 = vpop.xlane.xlu1 %675 }
 0x7ba   :  { %v678_v58 = vmul.f32 0.125, %v676_v56  ;;  %v673_v59 = vpop.xlane.xlu0 %672 }
 0x7bb   :  { %v677_v60 = vmul.f32 0.125, %v673_v59 }
 0x7bc   :  { %v680_v61 = vadd.f32 1e-05, %v678_v58 }
 0x7bd   :  { %v679_v62 = vadd.f32 1e-05, %v677_v60 }
 0x7be   :  { %2240 = vrsqrt.f32 %v680_v61 }
 0x7bf   :  { %2242 = vrsqrt.f32 %v679_v62  ;;  %v1972_v62 = vld [vmem:[%s2797_s6 + $0x3] sm:$0x7] }
 0x7c8   :  { %v2241_v63 = vpop.eup %2240 }
 0x7c9   :  { %v2243_v0 = vpop.eup %2242  ;;  %v684_v2 = vmul.f32 %v2241_v63, %v666_v47  ;;  %v951_v63 = vrot.slane %v1972_v62, %v2490_v14 }
 0x7ca   :  { %v683_v1 = vmul.f32 %v2243_v0, %v661_v49  ;;  %v1971_v49 = vld [vmem:[%s2796_s5 + $0x58] sm:$0xff]  ;;  %v955_v0 = vrot.slane %v1972_v62, %v2495_v16 }
 0x7cb   :  { %v2171_v51 = vpack.c.bf16 %v1971_v49, %v1968_v48 }
 0x7cc   :  { %2097 = vmatprep.mubr.msk.f32.mxu0 %vm53_vm0, %v683_v1 }
 0x7cd   :  { %2098 = vmatmul.mubr.msk.f32.vlgmr.msra.gmra.mrb[8].mxu0 %vm53_vm0, %v684_v2 }
 0x7ce   :  { %1033 = vmatprep.mubr.f32.mxu0 %v2336_v17  ;;  %2170 = vmatpush1.bf16.msra.mxu0 %v2169_v39 }
 0x7cf   :  { %2172 = vmatprep.subr.bf16.mxu0 %v2171_v51 }
 0x8a0   :  { %v2099_v4 = vpop.f32.mrb[8].mxu0 }
 0x8a1   :  { %v2551_v5 = vadd.f32 %v2099_v4, %v1952_v3  ;;  %v767_v6 = vpop.f32.mrb[9].mxu0 }
 0x8a2   :  { %v2553_v7 = vadd.f32 %v1952_v3, %v767_v6 }
 0x8a3   :  { %791 = vrot.lane.b32.xlu0 %v2551_v5, %s2338_s16 }
 0x915   :  { %v792_v8 = vpop.permute.xlu0 %791 }
 0x916   :  { %v794_v10 = vsel %vm176_vm2, %v2553_v7, %v792_v8 }
 0x917   :  { %2101 = vmatpush3.msra.mxu1 %v794_v10 }
 0x918   :  { %2103 = vmatmul.mubr.msk.f32.vlgmr.msra.gmra.mrb[8].mxu1 %vm53_vm0, %v1957_v9 }
 0x919   :  { %2105 = vmatprep.mubr.msk.f32.mxu1 %vm2337_vm1, %v2336_v17 }
 0x91c   :  { %2106 = vmatmul.mubr.msk.f32.gmra.mrb[10].mxu1 %vm53_vm0, %v1958_v11  ;;  %v959_v11 = vrot.slane %v1972_v62, %v2499_v27 }
 0x91d   :  { %2108 = vmatprep.mubr.msk.f32.mxu1 %vm2337_vm1, %v2336_v17 }
 0x920   :  { %2109 = vmatmul.mubr.msk.f32.gmra.mrb[12].mxu1 %vm53_vm0, %v1959_v12 }
 0x9eb   :  { %v874_v13 = vpop.f32.mrb[8].mxu1 }
 0x9ec   :  { %888 = vrot.lane.b32.xlu1 %v874_v13, %s2340_s23  ;;  %v2104_v15 = vpop.f32.mrb[9].mxu1 }
 0x9ef   :  { %v879_v18 = vpop.f32.mrb[10].mxu1 }
 0x9f0   :  { %v2107_v19 = vpop.f32.mrb[11].mxu1 }
 0x9f3   :  { %v884_v21 = vpop.f32.mrb[12].mxu1 }
 0x9f4   :  { %899 = vrot.lane.b32.xlu0 %v884_v21, %s2340_s23  ;;  %v2110_v23 = vpop.f32.mrb[13].mxu1 }
 0xa5e   :  { %v889_v20 = vpop.permute.xlu1 %888 }
 0xa5f   :  { %v890_v24 = vsel %vm270_vm3, %v889_v20, %v874_v13 }
 0xa60   :  { %891 = vrot.lane.b32.xlu1 %v890_v24, %s2340_s23 }
 0xa64   :  { %916 = vperm.xlu1 %2202, %v1963_v22  }
 0xa66   :  { %v900_v25 = vpop.permute.xlu0 %899 }
 0xa67   :  { %v901_v26 = vsel %vm270_vm3, %v900_v25, %v884_v21  ;;  %v1955_v25 = vmul.f32 -1.442695, %v2553_v7 }
 0xa68   :  { %902 = vrot.lane.b32.xlu0 %v901_v26, %s2340_s23 }
 0xad2   :  { %v892_v28 = vpop.permute.xlu1 %891 }
 0xad3   :  { %v893_v29 = vsel %vm270_vm3, %v892_v28, %v874_v13  ;;  %v1956_v28 = vmul.f32 -1.442695, %v2551_v5 }
 0xad4   :  { %895 = vrot.lane.b32.xlu0 %v893_v29, %s2341_s26 }
 0xada   :  { %v903_v30 = vpop.permute.xlu0 %902 }
 0xadb   :  { %v904_v31 = vsel %vm270_vm3, %v903_v30, %v884_v21 }
 0xadc   :  { %906 = vrot.lane.b32.xlu1 %v904_v31, %s2342_s27 }
 0xae3   :  { %v917_v41 = vpop.permute.xlu1 %916 }
 0xb46   :  { %v896_v40 = vpop.permute.xlu0 %895 }
 0xb47   :  { %v898_v42 = vsel %vm2466_vm4, 0.0, %v896_v40 }
 0xb48   :  { %v910_v35 = vadd.f32 %v898_v42, %v879_v18 }
 0xb4e   :  { %v907_v43 = vpop.permute.xlu1 %906 }
 0xb4f   :  { %v909_v44 = vsel %vm2472_vm5, 0.0, %v907_v43 }
 0xb50   :  { %v911_v37 = vadd.f32 %v910_v35, %v909_v44 }
 0xb52   :  { %v919_v45 = vadd.f32 %v917_v41, %v911_v37 }
 0xb54   :  { %v1964_v46 = vmul.f32 -1.442695, %v919_v45  ;;  %921 = vrot.lane.b32.xlu0 %v919_v45, %s2343_s0 }
 0xb56   :  { %2244 = vpow2.f32 %v1964_v46 }
 0xb60   :  { %v2245_v47 = vpop.eup %2244 }
 0xb61   :  { %v930_v50 = vadd.f32 1.0, %v2245_v47 }
 0xb63   :  { %2246 = vrcp.f32 %v930_v50 }
 0xb6d   :  { %v2247_v52 = vpop.eup %2246 }
 0xb6e   :  { %v936_v53 = vmul.f32 %v2247_v52, %v919_v45 }
 0xb70   :  { %1973 = vmatmul.mubr.msk.f32.vlgmr.msra.gmra.mrb[10].mxu0 %vm176_vm2, %v936_v53 }
 0xb71   :  { %1039 = vmatprep.mubr.f32.mxu0 %v2336_v17  ;;  %2174 = vmatpush3.bf16.msra.mxu0 %v2171_v51 }
 0xbc6   :  { %v922_v54 = vpop.permute.xlu0 %921 }
 0xbc7   :  { %v1965_v56 = vmul.f32 -1.442695, %v922_v54 }
 0xbc9   :  { %2248 = vpow2.f32 %v1965_v56 }
 0xbd3   :  { %v2249_v58 = vpop.eup %2248 }
 0xbd4   :  { %v931_v59 = vadd.f32 1.0, %v2249_v58 }
 0xbd6   :  { %2250 = vrcp.f32 %v931_v59 }
 0xbe0   :  { %v2251_v60 = vpop.eup %2250 }
 0xbe1   :  { %v937_v61 = vmul.f32 %v2251_v60, %v922_v54 }
 0xbe3   :  { %1974 = vmatmul.mubr.msk.f32.gmra.mrb[12].mxu0 %vm176_vm2, %v937_v61 }
 0xbe4   :  { %2115 = vmatprep.mubr.msk.f32.mxu0 %vm176_vm2, %v936_v53 }
 0xbe7   :  { %2116 = vmatmul.mubr.msk.f32.vlgmr.msra.gmra.mrb[14].mxu0 %vm176_vm2, %v937_v61 }
 0xc43   :  { %v1035_v1 = vpop.f32.mrb[10].mxu0 }
 0xc44   :  { %v1036_v2 = vadd.f32 %v1035_v1, %v951_v63  ;;  %v1037_v3 = vpop.f32.mrb[11].mxu0  ;;  %v1980_v1 = vld [vmem:[%s2798_s7 + $0x18] sm:$0xff] }
 0xc45   :  { %v1038_v4 = vadd.f32 %v1037_v3, %v955_v0 }
 0xc47   :  { %v1157_v6 = vmul.f32 %v1038_v4, %v1036_v2 }
 0xc49   :  { %1159 = vadd.xlane.f32.xlu1 %v1157_v6 }
 0xcb6   :  { %v1041_v8 = vpop.f32.mrb[12].mxu0 }
 0xcb7   :  { %v1042_v9 = vadd.f32 %v1041_v8, %v951_v63  ;;  %v1043_v10 = vpop.f32.mrb[13].mxu0 }
 0xcb8   :  { %v1044_v12 = vadd.f32 %v1043_v10, %v955_v0  ;;  %v1979_v0 = vld [vmem:[%s2798_s7 + $0x10] sm:$0xff] }
 0xcb9   :  { %v2175_v2 = vpack.c.bf16 %v1980_v1, %v1979_v0 }
 0xcba   :  { %v2117_v13 = vpop.f32.mrb[14].mxu0  ;;  %v1158_v15 = vmul.f32 %v1044_v12, %v1042_v9 }
 0xcbb   :  { %v2622_v18 = vadd.f32 %v2117_v13, %v959_v11  ;;  %v1112_v19 = vpop.f32.mrb[15].mxu0  ;;  %2176 = vmatprep.subr.bf16.mxu1 %v2175_v2 }
 0xcbc   :  { %v2624_v21 = vadd.f32 %v1112_v19, %v959_v11  ;;  %1161 = vadd.xlane.f32.xlu0 %v1158_v15  ;;  %2178 = vmatpush3.bf16.msra.mxu1 %v2175_v2 }
 0xcbd   :  { %v1128_v23 = vand.u32 2147483647, %v2622_v18  ;;  %v1122_v48 = vmax.f32 %v2622_v18, 0.0  ;;  %vm1124_vm12 = vcmp.ne.f32.partialorder %v2622_v18, %v2622_v18  ;;  %2130 = vmatprep.subr.mxu1 %v2336_v17 }
 0xcbe   :  { %v1127_v20 = vand.u32 2147483647, %v2624_v21  ;;  %v1121_v52 = vmax.f32 %v2624_v21, 0.0  ;;  %vm1123_vm13 = vcmp.ne.f32.partialorder %v2624_v21, %v2624_v21 }
 0xcbf   :  { %v1130_v24 = vsub.f32 0.0, %v1128_v23 }
 0xcc0   :  { %v1129_v22 = vsub.f32 0.0, %v1127_v20 }
 0xcc1   :  { %v1133_v26 = vmul.f32 1.442695, %v1130_v24 }
 0xcc2   :  { %v1131_v29 = vmul.f32 1.442695, %v1129_v22 }
 0xcc3   :  { %2252 = vpow2.f32 %v1133_v26 }
 0xcc4   :  { %2254 = vpow2.f32 %v1131_v29  ;;  %v1982_v29 = vld [vmem:[%s2799_s8 + $0x1] ss:$0 sm:$0xff] }
 0xcc5   :  { %2256 = vpow2.f32 %v1955_v25 }
 0xcc6   :  { %2258 = vpow2.f32 %v1956_v28 }
 0xccd   :  { %v2253_v30 = vpop.eup %2252 }
 0xcce   :  { %v2255_v31 = vpop.eup %2254  ;;  %v1144_v32 = vadd.f32 1.0, %v2253_v30  ;;  %v1147_v40 = vmul.f32 -0.5, %v2253_v30  ;;  %v1150_v35 = vand.u32 2147483647, %v2253_v30 }
 0xccf   :  { %v2257_v33 = vpop.eup %2256  ;;  %v1135_v34 = vadd.f32 1.0, %v2255_v31  ;;  %v1138_v41 = vmul.f32 -0.5, %v2255_v31  ;;  %v1141_v44 = vand.u32 2147483647, %v2255_v31 }
 0xcd0   :  { %v2259_v36 = vpop.eup %2258  ;;  %2260 = vlog2.f32 %v1144_v32  ;;  %v782_v38 = vadd.f32 1.0, %v2257_v33  ;;  %v1148_v42 = vadd.f32 1.0, %v1147_v40  ;;  %vm1151_vm10 = vcmp.lt.f32.partialorder %v1150_v35, 0.0004427343  ;;  %v1985_v40 = vld [vmem:[%s2792_s1 + $0x10] sm:$0xff] }
 0xcd1   :  { %2262 = vlog2.f32 %v1135_v34  ;;  %v783_v39 = vadd.f32 1.0, %v2259_v36  ;;  %v1139_v43 = vadd.f32 1.0, %v1138_v41  ;;  %vm1142_vm11 = vcmp.lt.f32.partialorder %v1141_v44, 0.0004427343  ;;  %2125 = vmatprep.subr.mxu0 %v1985_v40 }
 0xcd2   :  { %2264 = vrcp.f32 %v782_v38  ;;  %v1149_v47 = vmul.f32 %v2253_v30, %v1148_v42  ;;  %2126 = vmatpush3.msra.mxu0 %v1985_v40 }
 0xcd3   :  { %2266 = vrcp.f32 %v783_v39  ;;  %v1140_v50 = vmul.f32 %v2255_v31, %v1139_v43 }
 0xcda   :  { %v2261_v37 = vpop.eup %2260 }
 0xcdb   :  { %v2263_v45 = vpop.eup %2262  ;;  %v1146_v46 = vmul.f32 0.6931472, %v2261_v37 }
 0xcdc   :  { %v1137_v49 = vmul.f32 0.6931472, %v2263_v45  ;;  %v2265_v58 = vpop.eup %2264 }
 0xcdd   :  { %v1152_v51 = vsel %vm1151_vm10, %v1149_v47, %v1146_v46  ;;  %v2267_v60 = vpop.eup %2266  ;;  %v788_v62 = vmul.f32 %v2265_v58, %v2553_v7  ;;  %v1160_v7 = vpop.xlane.xlu1 %1159 }
 0xcde   :  { %v1154_v53 = vadd.f32 %v1152_v51, %v1122_v48  ;;  %v1143_v54 = vsel %vm1142_vm11, %v1140_v50, %v1137_v49  ;;  %v789_v63 = vmul.f32 %v2267_v60, %v2551_v5  ;;  %v1987_v49 = vld [vmem:[%s2793_s2 + $0x2] ss:$0 sm:$0xff] }
 0xcdf   :  { %v1153_v56 = vadd.f32 %v1143_v54, %v1121_v52  ;;  %v1994_v60 = vld [vmem:[%s2794_s3 + $0x40] sm:$0xff] }
 0xce0   :  { %v1156_v59 = vsel %vm1124_vm12, %v2622_v18, %v1154_v53 }
 0xce1   :  { %1167 = vrot.lane.b32.xlu1 %v1156_v59, %s2343_s0  ;;  %v1155_v61 = vsel %vm1123_vm13, %v2624_v21, %v1153_v56  ;;  %v1992_v56 = vld [vmem:[%s2794_s3 + $0x30] sm:$0xff]  ;;  %v1993_v59 = vld [vmem:[%s2794_s3 + $0x38] sm:$0xff] }
 0xce2   :  { %1165 = vrot.lane.b32.xlu0 %v1155_v61, %s2343_s0 }
 0xce5   :  { %1191 = vrot.lane.b32.xlu1 %v788_v62, %s2343_s0 }
 0xce6   :  { %1193 = vrot.lane.b32.xlu0 %v789_v63, %s2343_s0 }
 0xd49   :  { %v1162_v3 = vpop.xlane.xlu0 %1161 }
 0xd53   :  { %v1168_v5 = vpop.permute.xlu1 %1167 }
 0xd54   :  { %v1172_v4 = vmul.f32 %v1168_v5, %v2622_v18  ;;  %v1166_v6 = vpop.permute.xlu0 %1165  ;;  %v1998_v5 = vld [vmem:[%s2795_s4 + $0x10] sm:$0xff] }
 0xd55   :  { %v1171_v8 = vmul.f32 %v1166_v6, %v2624_v21 }
 0xd56   :  { %v1174_v9 = vmul.f32 %v1172_v4, %v1162_v3 }
 0xd57   :  { %v1173_v10 = vmul.f32 %v1171_v8, %v1160_v7  ;;  %v1192_v18 = vpop.permute.xlu1 %1191 }
 0xd58   :  { %v1978_v11 = vmul.f32 -1.442695, %v1174_v9  ;;  %v1194_v28 = vpop.permute.xlu0 %1193 }
 0xd59   :  { %v1977_v12 = vmul.f32 -1.442695, %v1173_v10 }
 0xd5a   :  { %2268 = vpow2.f32 %v1978_v11 }
 0xd5b   :  { %2270 = vpow2.f32 %v1977_v12  ;;  %v2002_v12 = vld [vmem:[%s2796_s5 + $0x68] sm:$0xff] }
 0xd64   :  { %v2269_v13 = vpop.eup %2268 }
 0xd65   :  { %v2271_v15 = vpop.eup %2270  ;;  %v1182_v19 = vadd.f32 1.0, %v2269_v13  ;;  %v2005_v13 = vld [vmem:[%s2796_s5 + $0x80] sm:$0xff] }
 0xd66   :  { %v1181_v23 = vadd.f32 1.0, %v2271_v15  ;;  %v2179_v15 = vpack.c.bf16 %v2005_v13, %v2002_v12 }
 0xd67   :  { %2272 = vrcp.f32 %v1182_v19  ;;  %v2001_v19 = vld [vmem:[%s2796_s5 + $0x60] sm:$0xff] }
 0xd68   :  { %2274 = vrcp.f32 %v1181_v23  ;;  %v2004_v23 = vld [vmem:[%s2796_s5 + $0x78] sm:$0xff]  ;;  %2180 = vmatprep.subr.bf16.mxu0 %v2179_v15 }
 0xd71   :  { %v2273_v20 = vpop.eup %2272 }
 0xd72   :  { %v2275_v24 = vpop.eup %2274  ;;  %v1188_v22 = vmul.f32 %v2273_v20, %v1174_v9  ;;  %v2181_v20 = vpack.c.bf16 %v2004_v23, %v2001_v19 }
 0xd73   :  { %v1187_v25 = vmul.f32 %v2275_v24, %v1173_v10 }
 0xd74   :  { %v1198_v21 = vmul.f32 %v1194_v28, %v1188_v22 }
 0xd75   :  { %v1197_v26 = vmul.f32 %v1192_v18, %v1187_v25 }
 0xd77   :  { %2122 = vmatprep.mubr.msk.f32.mxu1 %vm176_vm2, %v1197_v26 }
 0xd78   :  { %2123 = vmatmul.mubr.msk.f32.vlgmr.msra.gmra.mrb[14].mxu1 %vm176_vm2, %v1198_v21 }
 0xd79   :  { %2132 = vmatprep.mubr.msk.f32.mxu1 %vm2337_vm1, %v2336_v17 }
 0xe4b   :  { %v2124_v30 = vpop.f32.mrb[14].mxu1 }
 0xe4c   :  { %v1288_v31 = vadd.f32 %v2124_v30, %v1982_v29  ;;  %v1282_v32 = vpop.f32.mrb[15].mxu1 }
 0xe4d   :  { %v1283_v33 = vadd.f32 %v1982_v29, %v1282_v32  ;;  %v2003_v32 = vld [vmem:[%s2796_s5 + $0x70] sm:$0xff] }
 0xe4e   :  { %v1292_v34 = vmul.f32 %v1288_v31, %v1288_v31 }
 0xe4f   :  { %v1291_v36 = vmul.f32 %v1283_v33, %v1283_v33 }
 0xe50   :  { %v1296_v38 = vsel %vm53_vm0, %v1292_v34, 0.0  ;;  %v2183_v34 = vpack.c.bf16 %v2006_v55, %v2003_v32 }
 0xe51   :  { %1297 = vadd.xlane.f32.xlu0 %v1296_v38  ;;  %v1293_v39 = vsel %vm53_vm0, %v1291_v36, 0.0 }
 0xe52   :  { %1294 = vadd.xlane.f32.xlu1 %v1293_v39 }
 0xede   :  { %v1298_v41 = vpop.xlane.xlu0 %1297 }
 0xedf   :  { %v1300_v42 = vmul.f32 0.125, %v1298_v41  ;;  %v1295_v35 = vpop.xlane.xlu1 %1294 }
 0xee0   :  { %v1299_v43 = vmul.f32 0.125, %v1295_v35 }
 0xee1   :  { %v1302_v44 = vadd.f32 1e-05, %v1300_v42 }
 0xee2   :  { %v1301_v37 = vadd.f32 1e-05, %v1299_v43  ;;  %v2007_v43 = vld [vmem:[%s2797_s6 + $0x6] sm:$0x7] }
 0xee3   :  { %2276 = vrsqrt.f32 %v1302_v44  ;;  %v1577_v44 = vrot.slane %v2007_v43, %v2495_v16 }
 0xee4   :  { %2278 = vrsqrt.f32 %v1301_v37 }
 0xeed   :  { %v2277_v45 = vpop.eup %2276 }
 0xeee   :  { %v2279_v46 = vpop.eup %2278  ;;  %v1306_v48 = vmul.f32 %v2277_v45, %v1288_v31 }
 0xeef   :  { %v1305_v47 = vmul.f32 %v2279_v46, %v1283_v33 }
 0xef1   :  { %2127 = vmatprep.mubr.msk.f32.mxu0 %vm53_vm0, %v1305_v47 }
 0xef2   :  { %2128 = vmatmul.mubr.msk.f32.vlgmr.msra.gmra.mrb[16].mxu0 %vm53_vm0, %v1306_v48 }
 0xef3   :  { %1655 = vmatprep.mubr.f32.mxu0 %v2336_v17  ;;  %2182 = vmatpush1.bf16.msra.mxu0 %v2181_v20 }
 0xef4   :  { %2184 = vmatprep.subr.bf16.mxu0 %v2183_v34 }
 0xfc5   :  { %v2129_v50 = vpop.f32.mrb[16].mxu0 }
 0xfc6   :  { %v2671_v51 = vadd.f32 %v2129_v50, %v1987_v49  ;;  %v1389_v52 = vpop.f32.mrb[17].mxu0 }
 0xfc7   :  { %v2673_v53 = vadd.f32 %v1987_v49, %v1389_v52 }
 0xfc8   :  { %1413 = vrot.lane.b32.xlu0 %v2671_v51, %s2338_s16 }
0x103a   :  { %v1414_v54 = vpop.permute.xlu0 %1413 }
0x103b   :  { %v1416_v58 = vsel %vm176_vm2, %v2673_v53, %v1414_v54  ;;  %v1581_v54 = vrot.slane %v2007_v43, %v2499_v27  ;;  %v1991_v27 = vmul.f32 -1.442695, %v2671_v51 }
0x103c   :  { %2131 = vmatpush3.msra.mxu1 %v1416_v58 }
0x103d   :  { %2133 = vmatmul.mubr.msk.f32.vlgmr.msra.gmra.mrb[16].mxu1 %vm53_vm0, %v1992_v56 }
0x103e   :  { %2135 = vmatprep.mubr.msk.f32.mxu1 %vm2337_vm1, %v2336_v17 }
0x1041   :  { %2136 = vmatmul.mubr.msk.f32.gmra.mrb[18].mxu1 %vm53_vm0, %v1993_v59 }
0x1042   :  { %2138 = vmatprep.mubr.msk.f32.mxu1 %vm2337_vm1, %v2336_v17 }
0x1045   :  { %2139 = vmatmul.mubr.msk.f32.gmra.mrb[20].mxu1 %vm53_vm0, %v1994_v60 }
0x1110   :  { %v1496_v61 = vpop.f32.mrb[16].mxu1 }
0x1111   :  { %1510 = vrot.lane.b32.xlu1 %v1496_v61, %s2340_s23  ;;  %v2134_v62 = vpop.f32.mrb[17].mxu1 }
0x1114   :  { %v1501_v63 = vpop.f32.mrb[18].mxu1 }
0x1115   :  { %v2137_v0 = vpop.f32.mrb[19].mxu1 }
0x1118   :  { %v1506_v1 = vpop.f32.mrb[20].mxu1 }
0x1119   :  { %1521 = vrot.lane.b32.xlu1 %v1506_v1, %s2340_s23  ;;  %v2140_v2 = vpop.f32.mrb[21].mxu1 }
0x1183   :  { %v1511_v7 = vpop.permute.xlu1 %1510 }
0x1184   :  { %v1512_v3 = vsel %vm270_vm3, %v1511_v7, %v1496_v61 }
0x1185   :  { %1513 = vrot.lane.b32.xlu0 %v1512_v3, %s2340_s23 }
0x1189   :  { %1538 = vperm.xlu0 %2203, %v1998_v5  }
0x118b   :  { %v1522_v4 = vpop.permute.xlu1 %1521 }
0x118c   :  { %v1523_v6 = vsel %vm270_vm3, %v1522_v4, %v1506_v1 }
0x118d   :  { %1524 = vrot.lane.b32.xlu1 %v1523_v6, %s2340_s23 }
0x11f7   :  { %v1514_v8 = vpop.permute.xlu0 %1513 }
0x11f8   :  { %v1515_v9 = vsel %vm270_vm3, %v1514_v8, %v1496_v61 }
0x11f9   :  { %1517 = vrot.lane.b32.xlu1 %v1515_v9, %s2341_s26 }
0x11ff   :  { %v1525_v10 = vpop.permute.xlu1 %1524 }
0x1200   :  { %v1526_v11 = vsel %vm270_vm3, %v1525_v10, %v1506_v1  ;;  %v1990_v1 = vmul.f32 -1.442695, %v2673_v53 }
0x1201   :  { %1528 = vrot.lane.b32.xlu1 %v1526_v11, %s2342_s27 }
0x1208   :  { %v1539_v28 = vpop.permute.xlu0 %1538 }
0x126b   :  { %v1518_v24 = vpop.permute.xlu1 %1517 }
0x126c   :  { %v1520_v22 = vsel %vm2466_vm4, 0.0, %v1518_v24 }
0x126d   :  { %v1532_v25 = vadd.f32 %v1520_v22, %v1501_v63 }
0x1273   :  { %v1529_v18 = vpop.permute.xlu1 %1528 }
0x1274   :  { %v1531_v26 = vsel %vm2472_vm5, 0.0, %v1529_v18 }
0x1275   :  { %v1533_v21 = vadd.f32 %v1532_v25, %v1531_v26 }
0x1277   :  { %v1541_v29 = vadd.f32 %v1539_v28, %v1533_v21 }
0x1279   :  { %v1999_v30 = vmul.f32 -1.442695, %v1541_v29  ;;  %1543 = vrot.lane.b32.xlu0 %v1541_v29, %s2343_s0 }
0x127b   :  { %2280 = vpow2.f32 %v1999_v30 }
0x1285   :  { %v2281_v31 = vpop.eup %2280 }
0x1286   :  { %v1552_v33 = vadd.f32 1.0, %v2281_v31 }
0x1288   :  { %2282 = vrcp.f32 %v1552_v33 }
0x1292   :  { %v2283_v57 = vpop.eup %2282 }
0x1293   :  { %v1558_v36 = vmul.f32 %v2283_v57, %v1541_v29 }
0x1295   :  { %2008 = vmatmul.mubr.msk.f32.vlgmr.msra.gmra.mrb[18].mxu0 %vm176_vm2, %v1558_v36 }
0x1296   :  { %1661 = vmatprep.mubr.f32.mxu0 %v2336_v17  ;;  %2186 = vmatpush3.bf16.msra.mxu0 %v2183_v34  ;;  %v1573_v17 = vrot.slane %v2007_v43, %v2490_v14 }
0x12eb   :  { %v1544_v38 = vpop.permute.xlu0 %1543 }
0x12ec   :  { %v2000_v39 = vmul.f32 -1.442695, %v1544_v38 }
0x12ee   :  { %2284 = vpow2.f32 %v2000_v39 }
0x12f8   :  { %v2285_v40 = vpop.eup %2284 }
0x12f9   :  { %v1553_v41 = vadd.f32 1.0, %v2285_v40  ;;  %v2014_v40 = vld [vmem:[%s2798_s7 + $0x20] sm:$0xff] }
0x12fb   :  { %2286 = vrcp.f32 %v1553_v41  ;;  %v2015_v41 = vld [vmem:[%s2798_s7 + $0x28] sm:$0xff] }
0x1305   :  { %v2287_v42 = vpop.eup %2286 }
0x1306   :  { %v1559_v35 = vmul.f32 %v2287_v42, %v1544_v38  ;;  %v2187_v42 = vpack.c.bf16 %v2015_v41, %v2014_v40 }
0x1308   :  { %2009 = vmatmul.mubr.msk.f32.gmra.mrb[20].mxu0 %vm176_vm2, %v1559_v35  ;;  %2188 = vmatprep.subr.bf16.mxu1 %v2187_v42 }
0x1309   :  { %2145 = vmatprep.mubr.msk.f32.mxu0 %vm176_vm2, %v1558_v36  ;;  %2190 = vmatpush3.bf16.msra.mxu1 %v2187_v42 }
0x130c   :  { %2146 = vmatmul.mubr.msk.f32.vlgmr.msra.gmra.mrb[22].mxu0 %vm176_vm2, %v1559_v35 }
0x1368   :  { %v1657_v37 = vpop.f32.mrb[18].mxu0 }
0x1369   :  { %v1658_v45 = vadd.f32 %v1657_v37, %v1573_v17  ;;  %v1659_v46 = vpop.f32.mrb[19].mxu0 }
0x136a   :  { %v1660_v47 = vadd.f32 %v1659_v46, %v1577_v44 }
0x136c   :  { %v1779_v48 = vmul.f32 %v1660_v47, %v1658_v45 }
0x136e   :  { %1781 = vadd.xlane.f32.xlu1 %v1779_v48 }
0x13db   :  { %v1663_v49 = vpop.f32.mrb[20].mxu0 }
0x13dc   :  { %v1664_v50 = vadd.f32 %v1663_v49, %v1573_v17  ;;  %v1665_v52 = vpop.f32.mrb[21].mxu0 }
0x13dd   :  { %v1666_v56 = vadd.f32 %v1665_v52, %v1577_v44 }
0x13df   :  { %v2147_v58 = vpop.f32.mrb[22].mxu0  ;;  %v1780_v59 = vmul.f32 %v1666_v56, %v1664_v50 }
0x13e0   :  { %v2742_v60 = vadd.f32 %v2147_v58, %v1581_v54  ;;  %v1734_v61 = vpop.f32.mrb[23].mxu0 }
0x13e1   :  { %v2744_v14 = vadd.f32 %v1734_v61, %v1581_v54  ;;  %1783 = vadd.xlane.f32.xlu0 %v1780_v59 }
0x13e2   :  { %v1750_v16 = vand.u32 2147483647, %v2742_v60  ;;  %v1744_v26 = vmax.f32 %v2742_v60, 0.0  ;;  %vm1746_vm1 = vcmp.ne.f32.partialorder %v2742_v60, %v2742_v60 }
0x13e3   :  { %v1749_v62 = vand.u32 2147483647, %v2744_v14  ;;  %v1743_v30 = vmax.f32 %v2744_v14, 0.0  ;;  %vm1745_vm3 = vcmp.ne.f32.partialorder %v2744_v14, %v2744_v14 }
0x13e4   :  { %v1752_v63 = vsub.f32 0.0, %v1750_v16 }
0x13e5   :  { %v1751_v0 = vsub.f32 0.0, %v1749_v62  ;;  %v2017_v62 = vld [vmem:[%s2799_s8 + $0x2] ss:$0 sm:$0xff] }
0x13e6   :  { %v1755_v2 = vmul.f32 1.442695, %v1752_v63 }
0x13e7   :  { %v1753_v7 = vmul.f32 1.442695, %v1751_v0 }
0x13e8   :  { %2288 = vpow2.f32 %v1755_v2 }
0x13e9   :  { %2290 = vpow2.f32 %v1753_v7 }
0x13ea   :  { %2292 = vpow2.f32 %v1990_v1 }
0x13eb   :  { %2294 = vpow2.f32 %v1991_v27 }
0x13f2   :  { %v2289_v3 = vpop.eup %2288 }
0x13f3   :  { %v2291_v5 = vpop.eup %2290  ;;  %v1766_v4 = vadd.f32 1.0, %v2289_v3  ;;  %v1769_v12 = vmul.f32 -0.5, %v2289_v3  ;;  %v1772_v19 = vand.u32 2147483647, %v2289_v3 }
0x13f4   :  { %v2293_v6 = vpop.eup %2292  ;;  %v1757_v8 = vadd.f32 1.0, %v2291_v5  ;;  %v1760_v13 = vmul.f32 -0.5, %v2291_v5  ;;  %v1763_v20 = vand.u32 2147483647, %v2291_v5 }
0x13f5   :  { %v2295_v9 = vpop.eup %2294  ;;  %2296 = vlog2.f32 %v1766_v4  ;;  %v1404_v10 = vadd.f32 1.0, %v2293_v6  ;;  %v1770_v15 = vadd.f32 1.0, %v1769_v12  ;;  %vm1773_vm14 = vcmp.lt.f32.partialorder %v1772_v19, 0.0004427343 }
0x13f6   :  { %2298 = vlog2.f32 %v1757_v8  ;;  %v1405_v11 = vadd.f32 1.0, %v2295_v9  ;;  %v1761_v23 = vadd.f32 1.0, %v1760_v13  ;;  %vm1764_vm15 = vcmp.lt.f32.partialorder %v1763_v20, 0.0004427343 }
0x13f7   :  { %2300 = vrcp.f32 %v1404_v10  ;;  %v1771_v18 = vmul.f32 %v2289_v3, %v1770_v15 }
0x13f8   :  { %2302 = vrcp.f32 %v1405_v11  ;;  %v1762_v21 = vmul.f32 %v2291_v5, %v1761_v23 }
0x13fb   :  { %v1782_v35 = vpop.xlane.xlu1 %1781 }
0x13ff   :  { %v2297_v24 = vpop.eup %2296 }
0x1400   :  { %v2299_v22 = vpop.eup %2298  ;;  %v1768_v25 = vmul.f32 0.6931472, %v2297_v24 }
0x1401   :  { %v1759_v28 = vmul.f32 0.6931472, %v2299_v22  ;;  %v2301_v33 = vpop.eup %2300 }
0x1402   :  { %v1774_v29 = vsel %vm1773_vm14, %v1771_v18, %v1768_v25  ;;  %v2303_v57 = vpop.eup %2302  ;;  %v1410_v38 = vmul.f32 %v2301_v33, %v2673_v53 }
0x1403   :  { %v1776_v31 = vadd.f32 %v1774_v29, %v1744_v26  ;;  %v1765_v32 = vsel %vm1764_vm15, %v1762_v21, %v1759_v28  ;;  %v1411_v39 = vmul.f32 %v2303_v57, %v2671_v51 }
0x1404   :  { %v1775_v55 = vadd.f32 %v1765_v32, %v1743_v30 }
0x1405   :  { %v1778_v34 = vsel %vm1746_vm1, %v2742_v60, %v1776_v31 }
0x1406   :  { %1789 = vrot.lane.b32.xlu1 %v1778_v34, %s2343_s0  ;;  %v1777_v36 = vsel %vm1745_vm3, %v2744_v14, %v1775_v55 }
0x1407   :  { %1787 = vrot.lane.b32.xlu0 %v1777_v36, %s2343_s0 }
0x140a   :  { %1813 = vrot.lane.b32.xlu1 %v1410_v38, %s2343_s0 }
0x140b   :  { %1815 = vrot.lane.b32.xlu0 %v1411_v39, %s2343_s0 }
0x146e   :  { %v1784_v43 = vpop.xlane.xlu0 %1783 }
0x1478   :  { %v1790_v53 = vpop.permute.xlu1 %1789 }
0x1479   :  { %v1794_v51 = vmul.f32 %v1790_v53, %v2742_v60  ;;  %v1788_v17 = vpop.permute.xlu0 %1787 }
0x147a   :  { %v1793_v44 = vmul.f32 %v1788_v17, %v2744_v14 }
0x147b   :  { %v1796_v37 = vmul.f32 %v1794_v51, %v1784_v43 }
0x147c   :  { %v1795_v45 = vmul.f32 %v1793_v44, %v1782_v35  ;;  %v1814_v60 = vpop.permute.xlu1 %1813 }
0x147d   :  { %v2013_v46 = vmul.f32 -1.442695, %v1796_v37  ;;  %v1816_v16 = vpop.permute.xlu0 %1815 }
0x147e   :  { %v2012_v47 = vmul.f32 -1.442695, %v1795_v45 }
0x147f   :  { %2304 = vpow2.f32 %v2013_v46 }
0x1480   :  { %2306 = vpow2.f32 %v2012_v47 }
0x1489   :  { %v2305_v48 = vpop.eup %2304 }
0x148a   :  { %v2307_v49 = vpop.eup %2306  ;;  %v1804_v50 = vadd.f32 1.0, %v2305_v48 }
0x148b   :  { %v1803_v52 = vadd.f32 1.0, %v2307_v49 }
0x148c   :  { %2308 = vrcp.f32 %v1804_v50 }
0x148d   :  { %2310 = vrcp.f32 %v1803_v52 }
0x1496   :  { %v2309_v54 = vpop.eup %2308 }
0x1497   :  { %v2311_v56 = vpop.eup %2310  ;;  %v1810_v58 = vmul.f32 %v2309_v54, %v1796_v37 }
0x1498   :  { %v1809_v59 = vmul.f32 %v2311_v56, %v1795_v45 }
0x1499   :  { %v1820_v14 = vmul.f32 %v1816_v16, %v1810_v58 }
0x149a   :  { %v1819_v61 = vmul.f32 %v1814_v60, %v1809_v59 }
0x149c   :  { %2152 = vmatprep.mubr.msk.f32.mxu1 %vm176_vm2, %v1819_v61 }
0x149d   :  { %2153 = vmatmul.mubr.msk.f32.vlgmr.msra.gmra.mrb[22].mxu1 %vm176_vm2, %v1820_v14 }
0x1570   :  { %v2154_v63 = vpop.f32.mrb[22].mxu1 }
0x1571   :  { %v1910_v0 = vadd.f32 %v2154_v63, %v2017_v62  ;;  %v1904_v1 = vpop.f32.mrb[23].mxu1 }
0x1572   :  { %v1905_v2 = vadd.f32 %v2017_v62, %v1904_v1 }
0x1573   :  { %1914 = vst.msk [vmem:[#allocation2 + $0x8] sm:$0xff] %vm53_vm0, %v1910_v0 }
0x1574   :  { %1913 = vst.msk [vmem:[#allocation2] sm:$0xff] %vm53_vm0, %v1905_v2 }
0x1575   :  { %2323 = shalt.err (!%p2320_p4)
}
0x1576   :  { %s2324_s13 = scalar_lea.hbm %s2800_s9, 256 }
0x1577   :  { %p2325_p5 = scmp.ne.s32.totalorder %s2800_s9, %s2324_s13  ;;  %p2328_p6 = scmp.lt.u32.totalorder %s2324_s13, %s2800_s9 }
0x1579   :  { %p2330_p7 = pnand %p2328_p6, %p2325_p5 }
0x157b   :  { %2333 = shalt.err (!%p2330_p7)
}
0x157c   :  { %s2345_s3 = smov 128   ;;  %s2346_s18 = smov 8  }
0x157d   :  { %1926 = dma.vmem_to_hbm [thread:$0]  %s1921_s11, 256, %s2800_s9, [#allocation3], %s2345_s3, %s2345_s3, %s2346_s18  }
0x157e   :  { %2334 = dma.done.wait [#allocation3], 256  }
0x157f   :  { %2335 = vsyncadd [#allocation3], 4294967040 }
0x1580   :  { %1930 = vsyncpa [#allocation3], 1 }

</bundles_post_ra>
